<compile_context>
chip_gen: v7x
topology: tpu7x:2x2x1
jax: 0.10.0
libtpu: 0.0.40
codegen_flags: <defaults>
</compile_context>

<pallas_src>
import jax
import jax.numpy as jnp
from jax.experimental import pallas as pl
from jax.experimental.pallas import tpu as pltpu


def _mlp(x, ln_ref, w1_ref, w234_ref, b_ref):
    """LayerNorm -> (Linear+ReLU) x3 -> Linear, all operands resident in VMEM.

    x: [B, in] f32.  Weights bf16, LN/bias f32.  Matmuls run in bf16 on the MXU
    with f32 accumulation.
    """
    in_dim = x.shape[-1]
    inv_d = 1.0 / in_dim

    gamma = ln_ref[0:1, :]
    beta = ln_ref[1:2, :]

    # Two independent reductions (shorter serial chain than mean -> xc -> var).
    s1 = jnp.sum(x, axis=-1, keepdims=True)
    s2 = jnp.sum(x * x, axis=-1, keepdims=True)
    mean = s1 * inv_d
    var = s2 * inv_d - mean * mean
    h = (x - mean) * jax.lax.rsqrt(var + 1e-5) * gamma + beta

    # Layer 1: [in, 256]
    h = jnp.dot(h.astype(jnp.bfloat16), w1_ref[...],
                preferred_element_type=jnp.float32) + b_ref[:, 0:256]
    h = jnp.maximum(h, 0.0)
    # Layer 2: [256, 128]
    h = jnp.dot(h.astype(jnp.bfloat16), w234_ref[0:256, :],
                preferred_element_type=jnp.float32) + b_ref[:, 256:384]
    h = jnp.maximum(h, 0.0)
    # Layer 3: [128, 128] (true 128x64, zero-padded)
    h = jnp.dot(h.astype(jnp.bfloat16), w234_ref[256:384, :],
                preferred_element_type=jnp.float32) + b_ref[:, 384:512]
    h = jnp.maximum(h, 0.0)
    # Layer 4: [128, 128] (true 64x32, zero-padded)
    h = jnp.dot(h.astype(jnp.bfloat16), w234_ref[384:512, :],
                preferred_element_type=jnp.float32) + b_ref[:, 512:640]
    return h


def _fused_kernel(pa_ref, pi_ref, ni_ref,
                  ln_a, w1_a, w234_a, b_a,
                  ln_i, w1_i, w234_i, b_i,
                  a_out, i_out):
    """Grid step 0: audio + pos image.  Grid step 1: neg image (audio block zeroed)."""
    step = pl.program_id(0)

    @pl.when(step == 0)
    def _():
        res = _mlp(pa_ref[...], ln_a, w1_a, w234_a, b_a)
        a_out[0, :, :] = res.astype(a_out.dtype)

    @pl.when(step != 0)
    def _():
        a_out[...] = jnp.zeros_like(a_out)   # own block; discarded in wrapper

    img_x = jnp.where(step == 0, pi_ref[...], ni_ref[...])
    res_i = _mlp(img_x, ln_i, w1_i, w234_i, b_i)
    i_out[0, :, :] = res_i.astype(i_out.dtype)


def _cost_estimate(batch_a, batch_i, audio_params, image_params):
    def pipe(batch, params):
        _, w1, w234, _ = params
        flops = 2 * batch * (w1.shape[0] * w1.shape[1]
                             + w234.shape[0] * w234.shape[1])
        pbytes = sum(int(p.size) * p.dtype.itemsize for p in params)
        return flops, pbytes

    fa, pa = pipe(batch_a, audio_params)
    fi, pi = pipe(2 * batch_i, image_params)
    in_a = audio_params[0].shape[1]
    in_i = image_params[0].shape[1]
    act_bytes = 4 * (batch_a * (in_a + 2 * 128) + 2 * batch_i * (in_i + 128))
    return pl.CostEstimate(flops=fa + fi,
                           transcendentals=batch_a + 2 * batch_i,
                           bytes_accessed=pa + pi + act_bytes)


def fused_network_call(pos_audios, pos_images, neg_images, audio_params, image_params):
    """Single pallas_call running both pipelines over a size-2 parallel grid."""
    batch_a = pos_audios.shape[0]
    batch_i = pos_images.shape[0]
    args = (pos_audios, pos_images, neg_images) + tuple(audio_params) + tuple(image_params)

    def full_spec(x):
        nd = x.ndim
        return pl.BlockSpec(x.shape, lambda i, nd=nd: (0,) * nd)

    in_specs = [full_spec(a) for a in args]
    out_specs = (pl.BlockSpec((1, batch_a, 128), lambda i: (i, 0, 0)),
                 pl.BlockSpec((1, batch_i, 128), lambda i: (i, 0, 0)))
    out_shape = (jax.ShapeDtypeStruct((2, batch_a, 128), jnp.float32),
                 jax.ShapeDtypeStruct((2, batch_i, 128), jnp.float32))

    return pl.pallas_call(
        _fused_kernel,
        grid=(2,),
        in_specs=in_specs,
        out_specs=out_specs,
        out_shape=out_shape,
        compiler_params=pltpu.CompilerParams(dimension_semantics=("parallel",)),
        cost_estimate=_cost_estimate(batch_a, batch_i, audio_params, image_params),
    )(*args)


def make_mlp_params(key, in_dim):
    """Packed parameters for LayerNorm(in) + Linear(in,256)/ReLU .. Linear(64,32).

    Returns (ln [2,in] f32, w1 [in,256] bf16, w234 [512,128] bf16, bias [1,640] f32).
    Narrow tail dims are zero-padded to 128 lanes; padded entries are zero so the
    padded output columns are exactly 0 through ReLU and sliced off at the end.
    """
    true_dims = [in_dim, 256, 128, 64, 32]
    pad_dims = [in_dim, 256, 128, 128, 128]
    keys = jax.random.split(key, 2 * (len(true_dims) - 1))

    gamma = jnp.ones((in_dim,), jnp.float32)
    beta = jnp.zeros((in_dim,), jnp.float32)
    ln = jnp.stack([gamma, beta], axis=0)                       # [2, in]

    ws, bs = [], []
    for i in range(len(true_dims) - 1):
        fan_in, fan_out = true_dims[i], true_dims[i + 1]
        p_in, p_out = pad_dims[i], pad_dims[i + 1]
        bound = 1.0 / float(fan_in) ** 0.5
        w = jax.random.uniform(keys[2 * i], (fan_in, fan_out), jnp.float32,
                               minval=-bound, maxval=bound)
        b = jax.random.uniform(keys[2 * i + 1], (fan_out,), jnp.float32,
                               minval=-bound, maxval=bound)
        w_pad = jnp.zeros((p_in, p_out), jnp.float32).at[:fan_in, :fan_out].set(w)
        b_pad = jnp.zeros((p_out,), jnp.float32).at[:fan_out].set(b)
        ws.append(w_pad.astype(jnp.bfloat16))
        bs.append(b_pad)

    w1 = ws[0]                                                  # [in, 256] bf16
    w234 = jnp.concatenate(ws[1:], axis=0)                      # [512, 128] bf16
    bias = jnp.concatenate(bs, axis=0)[None, :]                 # [1, 640] f32
    return (ln, w1, w234, bias)


def mlp_reference(x, params):
    """Pure-JAX reference using the same packed (bf16-weight) parameters."""
    ln, w1, w234, bias = params
    gamma, beta = ln[0:1, :], ln[1:2, :]
    inv_d = 1.0 / x.shape[-1]
    s1 = jnp.sum(x, axis=-1, keepdims=True)
    s2 = jnp.sum(x * x, axis=-1, keepdims=True)
    mean = s1 * inv_d
    var = s2 * inv_d - mean * mean
    h = (x - mean) * jax.lax.rsqrt(var + 1e-5) * gamma + beta
    ws = [w1, w234[0:256], w234[256:384], w234[384:512]]
    bs = [bias[:, 0:256], bias[:, 256:384], bias[:, 384:512], bias[:, 512:640]]
    for l, (w, b) in enumerate(zip(ws, bs)):
        h = jnp.dot(h.astype(w.dtype), w, preferred_element_type=jnp.float32) + b
        if l < len(ws) - 1:
            h = jnp.maximum(h, 0.0)
    return h[:, :32]


@jax.jit
def network_forward(pos_audios, pos_images, neg_images, audio_params, image_params):
    """Equivalent of Network.forward: one fused Pallas launch for all three passes."""
    out_a, out_i = fused_network_call(pos_audios, pos_images, neg_images,
                                      audio_params, image_params)
    # Padded columns 32:128 are exactly zero; slice back to the true width.
    return out_a[0, :, :32], out_i[0, :, :32], out_i[1, :, :32]


if __name__ == "__main__":
    key = jax.random.PRNGKey(0)
    k_audio_p, k_image_p, k_a, k_ip, k_in = jax.random.split(key, 5)

    batch = 8
    audio_params = make_mlp_params(k_audio_p, 192)
    image_params = make_mlp_params(k_image_p, 512)

    pos_audios = jax.random.normal(k_a, (batch, 192), jnp.float32)
    pos_images = jax.random.normal(k_ip, (batch, 512), jnp.float32)
    neg_images = jax.random.normal(k_in, (batch, 512), jnp.float32)

    out_a, out_p, out_n = network_forward(
        pos_audios, pos_images, neg_images, audio_params, image_params)
    jax.block_until_ready((out_a, out_p, out_n))

    # Correctness check against a pure-JAX reference using identical params.
    ref_a = mlp_reference(pos_audios, audio_params)
    ref_p = mlp_reference(pos_images, image_params)
    ref_n = mlp_reference(neg_images, image_params)
    assert out_a.shape == (batch, 32)
    assert out_p.shape == (batch, 32)
    assert out_n.shape == (batch, 32)
    assert jnp.allclose(out_a, ref_a, atol=2e-3, rtol=2e-3)
    assert jnp.allclose(out_p, ref_p, atol=2e-3, rtol=2e-3)
    assert jnp.allclose(out_n, ref_n, atol=2e-3, rtol=2e-3)

    print("KERNEL_OK")
</pallas_src>

<mosaic_0001>
module attributes {stable_mosaic.version = 11 : i64} {
  func.func @_fused_kernel(%arg0: i32, %arg1: memref<8x192xf32, #tpu.memory_space<vmem>>, %arg2: memref<8x512xf32, #tpu.memory_space<vmem>>, %arg3: memref<8x512xf32, #tpu.memory_space<vmem>>, %arg4: memref<2x192xf32, #tpu.memory_space<vmem>>, %arg5: memref<192x256xbf16, #tpu.memory_space<vmem>>, %arg6: memref<512x128xbf16, #tpu.memory_space<vmem>>, %arg7: memref<1x640xf32, #tpu.memory_space<vmem>>, %arg8: memref<2x512xf32, #tpu.memory_space<vmem>>, %arg9: memref<512x256xbf16, #tpu.memory_space<vmem>>, %arg10: memref<512x128xbf16, #tpu.memory_space<vmem>>, %arg11: memref<1x640xf32, #tpu.memory_space<vmem>>, %arg12: memref<1x8x128xf32, #tpu.memory_space<vmem>>, %arg13: memref<1x8x128xf32, #tpu.memory_space<vmem>>) attributes {dimension_semantics = [#tpu.dimension_semantics<parallel>], iteration_bounds = array<i64: 2>, scalar_prefetch = 0 : i64, scratch_operands = 0 : i64, tpu.core_type = #tpu.core_type<tc>, window_params = [{pipeline_mode = #tpu.pipeline_mode<synchronous>, transform_indices = @transform_0, window_bounds = array<i64: 8, 192>}, {pipeline_mode = #tpu.pipeline_mode<synchronous>, transform_indices = @transform_1, window_bounds = array<i64: 8, 512>}, {pipeline_mode = #tpu.pipeline_mode<synchronous>, transform_indices = @transform_2, window_bounds = array<i64: 8, 512>}, {pipeline_mode = #tpu.pipeline_mode<synchronous>, transform_indices = @transform_3, window_bounds = array<i64: 2, 192>}, {pipeline_mode = #tpu.pipeline_mode<synchronous>, transform_indices = @transform_4, window_bounds = array<i64: 192, 256>}, {pipeline_mode = #tpu.pipeline_mode<synchronous>, transform_indices = @transform_5, window_bounds = array<i64: 512, 128>}, {pipeline_mode = #tpu.pipeline_mode<synchronous>, transform_indices = @transform_6, window_bounds = array<i64: 1, 640>}, {pipeline_mode = #tpu.pipeline_mode<synchronous>, transform_indices = @transform_7, window_bounds = array<i64: 2, 512>}, {pipeline_mode = #tpu.pipeline_mode<synchronous>, transform_indices = @transform_8, window_bounds = array<i64: 512, 256>}, {pipeline_mode = #tpu.pipeline_mode<synchronous>, transform_indices = @transform_9, window_bounds = array<i64: 512, 128>}, {pipeline_mode = #tpu.pipeline_mode<synchronous>, transform_indices = @transform_10, window_bounds = array<i64: 1, 640>}, {transform_indices = @transform_11, window_bounds = array<i64: 1, 8, 128>}, {transform_indices = @transform_12, window_bounds = array<i64: 1, 8, 128>}]} {
    %c0_i32 = arith.constant 0 : i32
    %0 = arith.cmpi eq, %arg0, %c0_i32 : i32
    %1 = arith.extui %0 : i1 to i32
    %c0_i32_0 = arith.constant 0 : i32
    %2 = arith.cmpi ne, %1, %c0_i32_0 : i32
    scf.if %2 {
      %c0_37 = arith.constant 0 : index
      %c0_38 = arith.constant 0 : index
      %67 = vector.load %arg1[%c0_37, %c0_38] : memref<8x192xf32, #tpu.memory_space<vmem>>, vector<8x192xf32>
      %c0_39 = arith.constant 0 : index
      %c0_40 = arith.constant 0 : index
      %68 = vector.load %arg4[%c0_39, %c0_40] : memref<2x192xf32, #tpu.memory_space<vmem>>, vector<1x192xf32>
      %c1_41 = arith.constant 1 : index
      %c0_42 = arith.constant 0 : index
      %69 = vector.load %arg4[%c1_41, %c0_42] : memref<2x192xf32, #tpu.memory_space<vmem>>, vector<1x192xf32>
      %cst_43 = arith.constant dense<0.000000e+00> : vector<8xf32>
      %70 = vector.multi_reduction <add>, %67, %cst_43 [1] : vector<8x192xf32> to vector<8xf32>
      %71 = vector.shape_cast %70 : vector<8xf32> to vector<8x1xf32>
      %72 = arith.mulf %67, %67 : vector<8x192xf32>
      %cst_44 = arith.constant dense<0.000000e+00> : vector<8xf32>
      %73 = vector.multi_reduction <add>, %72, %cst_44 [1] : vector<8x192xf32> to vector<8xf32>
      %74 = vector.shape_cast %73 : vector<8xf32> to vector<8x1xf32>
      %cst_45 = arith.constant 0.00520833349 : f32
      %75 = vector.broadcast %cst_45 : f32 to vector<8x1xf32>
      %76 = arith.mulf %71, %75 : vector<8x1xf32>
      %cst_46 = arith.constant 0.00520833349 : f32
      %77 = vector.broadcast %cst_46 : f32 to vector<8x1xf32>
      %78 = arith.mulf %74, %77 : vector<8x1xf32>
      %79 = arith.mulf %76, %76 : vector<8x1xf32>
      %80 = arith.subf %78, %79 : vector<8x1xf32>
      %81 = vector.broadcast %76 : vector<8x1xf32> to vector<8x192xf32>
      %82 = arith.subf %67, %81 : vector<8x192xf32>
      %cst_47 = arith.constant 9.99999974E-6 : f32
      %83 = vector.broadcast %cst_47 : f32 to vector<8x1xf32>
      %84 = arith.addf %80, %83 : vector<8x1xf32>
      %85 = math.rsqrt %84 : vector<8x1xf32>
      %86 = vector.broadcast %85 : vector<8x1xf32> to vector<8x192xf32>
      %87 = arith.mulf %82, %86 : vector<8x192xf32>
      %88 = vector.broadcast %68 : vector<1x192xf32> to vector<8x192xf32>
      %89 = arith.mulf %87, %88 : vector<8x192xf32>
      %90 = vector.broadcast %69 : vector<1x192xf32> to vector<8x192xf32>
      %91 = arith.addf %89, %90 : vector<8x192xf32>
      %92 = arith.truncf %91 : vector<8x192xf32> to vector<8x192xbf16>
      %c0_48 = arith.constant 0 : index
      %c0_49 = arith.constant 0 : index
      %93 = vector.load %arg5[%c0_48, %c0_49] : memref<192x256xbf16, #tpu.memory_space<vmem>>, vector<192x256xbf16>
      %cst_50 = arith.constant dense<0.000000e+00> : vector<8x256xf32>
      %94 = tpu.matmul %92, %93, %cst_50 {dimension_numbers = #tpu.dot_dimension_numbers<[1], [0], [0], [1], [0, 0, 1, 1], [], []>} : vector<8x192xbf16>, vector<192x256xbf16>, vector<8x256xf32> -> vector<8x256xf32>
      %c0_51 = arith.constant 0 : index
      %c0_52 = arith.constant 0 : index
      %95 = vector.load %arg7[%c0_51, %c0_52] : memref<1x640xf32, #tpu.memory_space<vmem>>, vector<1x256xf32>
      %96 = vector.broadcast %95 : vector<1x256xf32> to vector<8x256xf32>
      %97 = arith.addf %94, %96 : vector<8x256xf32>
      %cst_53 = arith.constant 0.000000e+00 : f32
      %98 = vector.broadcast %cst_53 : f32 to vector<8x256xf32>
      %99 = arith.maximumf %97, %98 : vector<8x256xf32>
      %100 = arith.truncf %99 : vector<8x256xf32> to vector<8x256xbf16>
      %c0_54 = arith.constant 0 : index
      %c0_55 = arith.constant 0 : index
      %101 = vector.load %arg6[%c0_54, %c0_55] : memref<512x128xbf16, #tpu.memory_space<vmem>>, vector<256x128xbf16>
      %cst_56 = arith.constant dense<0.000000e+00> : vector<8x128xf32>
      %102 = tpu.matmul %100, %101, %cst_56 {dimension_numbers = #tpu.dot_dimension_numbers<[1], [0], [0], [1], [0, 0, 1, 1], [], []>} : vector<8x256xbf16>, vector<256x128xbf16>, vector<8x128xf32> -> vector<8x128xf32>
      %c0_57 = arith.constant 0 : index
      %c256_58 = arith.constant 256 : index
      %103 = vector.load %arg7[%c0_57, %c256_58] : memref<1x640xf32, #tpu.memory_space<vmem>>, vector<1x128xf32>
      %104 = vector.broadcast %103 : vector<1x128xf32> to vector<8x128xf32>
      %105 = arith.addf %102, %104 : vector<8x128xf32>
      %cst_59 = arith.constant 0.000000e+00 : f32
      %106 = vector.broadcast %cst_59 : f32 to vector<8x128xf32>
      %107 = arith.maximumf %105, %106 : vector<8x128xf32>
      %108 = arith.truncf %107 : vector<8x128xf32> to vector<8x128xbf16>
      %c256_60 = arith.constant 256 : index
      %c0_61 = arith.constant 0 : index
      %109 = vector.load %arg6[%c256_60, %c0_61] : memref<512x128xbf16, #tpu.memory_space<vmem>>, vector<128x128xbf16>
      %cst_62 = arith.constant dense<0.000000e+00> : vector<8x128xf32>
      %110 = tpu.matmul %108, %109, %cst_62 {dimension_numbers = #tpu.dot_dimension_numbers<[1], [0], [0], [1], [0, 0, 1, 1], [], []>} : vector<8x128xbf16>, vector<128x128xbf16>, vector<8x128xf32> -> vector<8x128xf32>
      %c0_63 = arith.constant 0 : index
      %c384_64 = arith.constant 384 : index
      %111 = vector.load %arg7[%c0_63, %c384_64] : memref<1x640xf32, #tpu.memory_space<vmem>>, vector<1x128xf32>
      %112 = vector.broadcast %111 : vector<1x128xf32> to vector<8x128xf32>
      %113 = arith.addf %110, %112 : vector<8x128xf32>
      %cst_65 = arith.constant 0.000000e+00 : f32
      %114 = vector.broadcast %cst_65 : f32 to vector<8x128xf32>
      %115 = arith.maximumf %113, %114 : vector<8x128xf32>
      %116 = arith.truncf %115 : vector<8x128xf32> to vector<8x128xbf16>
      %c384_66 = arith.constant 384 : index
      %c0_67 = arith.constant 0 : index
      %117 = vector.load %arg6[%c384_66, %c0_67] : memref<512x128xbf16, #tpu.memory_space<vmem>>, vector<128x128xbf16>
      %cst_68 = arith.constant dense<0.000000e+00> : vector<8x128xf32>
      %118 = tpu.matmul %116, %117, %cst_68 {dimension_numbers = #tpu.dot_dimension_numbers<[1], [0], [0], [1], [0, 0, 1, 1], [], []>} : vector<8x128xbf16>, vector<128x128xbf16>, vector<8x128xf32> -> vector<8x128xf32>
      %c0_69 = arith.constant 0 : index
      %c512_70 = arith.constant 512 : index
      %119 = vector.load %arg7[%c0_69, %c512_70] : memref<1x640xf32, #tpu.memory_space<vmem>>, vector<1x128xf32>
      %120 = vector.broadcast %119 : vector<1x128xf32> to vector<8x128xf32>
      %121 = arith.addf %118, %120 : vector<8x128xf32>
      %c0_71 = arith.constant 0 : index
      %c0_72 = arith.constant 0 : index
      %c0_73 = arith.constant 0 : index
      %122 = vector.load %arg12[%c0_71, %c0_72, %c0_73] : memref<1x8x128xf32, #tpu.memory_space<vmem>>, vector<1x8x128xf32>
      %123 = vector.shape_cast %122 : vector<1x8x128xf32> to vector<8x128xf32>
      %124 = vector.shape_cast %121 : vector<8x128xf32> to vector<1x8x128xf32>
      tpu.vector_store %arg12[%c0_71, %c0_72, %c0_73], %124 {strides = array<i32>} : memref<1x8x128xf32, #tpu.memory_space<vmem>>, vector<1x8x128xf32>,
    } else {
    }
    %c0_i32_1 = arith.constant 0 : i32
    %3 = arith.cmpi ne, %arg0, %c0_i32_1 : i32
    %4 = arith.extui %3 : i1 to i32
    %c0_i32_2 = arith.constant 0 : i32
    %5 = arith.cmpi ne, %4, %c0_i32_2 : i32
    scf.if %5 {
      %cst_37 = arith.constant 0.000000e+00 : f32
      %67 = vector.broadcast %cst_37 : f32 to vector<1x8x128xf32>
      %c0_38 = arith.constant 0 : index
      %c0_39 = arith.constant 0 : index
      %c0_40 = arith.constant 0 : index
      %68 = vector.load %arg12[%c0_38, %c0_39, %c0_40] : memref<1x8x128xf32, #tpu.memory_space<vmem>>, vector<1x8x128xf32>
      tpu.vector_store %arg12[%c0_38, %c0_39, %c0_40], %67 {strides = array<i32>} : memref<1x8x128xf32, #tpu.memory_space<vmem>>, vector<1x8x128xf32>,
    } else {
    }
    %c0_i32_3 = arith.constant 0 : i32
    %6 = arith.cmpi eq, %arg0, %c0_i32_3 : i32
    %c0 = arith.constant 0 : index
    %c0_4 = arith.constant 0 : index
    %7 = vector.load %arg2[%c0, %c0_4] : memref<8x512xf32, #tpu.memory_space<vmem>>, vector<8x512xf32>
    %c0_5 = arith.constant 0 : index
    %c0_6 = arith.constant 0 : index
    %8 = vector.load %arg3[%c0_5, %c0_6] : memref<8x512xf32, #tpu.memory_space<vmem>>, vector<8x512xf32>
    %9 = arith.select %6, %7, %8 : vector<8x512xf32>
    %c0_7 = arith.constant 0 : index
    %c0_8 = arith.constant 0 : index
    %10 = vector.load %arg8[%c0_7, %c0_8] : memref<2x512xf32, #tpu.memory_space<vmem>>, vector<1x512xf32>
    %c1 = arith.constant 1 : index
    %c0_9 = arith.constant 0 : index
    %11 = vector.load %arg8[%c1, %c0_9] : memref<2x512xf32, #tpu.memory_space<vmem>>, vector<1x512xf32>
    %cst = arith.constant dense<0.000000e+00> : vector<8xf32>
    %12 = vector.multi_reduction <add>, %9, %cst [1] : vector<8x512xf32> to vector<8xf32>
    %13 = vector.shape_cast %12 : vector<8xf32> to vector<8x1xf32>
    %14 = arith.mulf %9, %9 : vector<8x512xf32>
    %cst_10 = arith.constant dense<0.000000e+00> : vector<8xf32>
    %15 = vector.multi_reduction <add>, %14, %cst_10 [1] : vector<8x512xf32> to vector<8xf32>
    %16 = vector.shape_cast %15 : vector<8xf32> to vector<8x1xf32>
    %cst_11 = arith.constant 0.001953125 : f32
    %17 = vector.broadcast %cst_11 : f32 to vector<8x1xf32>
    %18 = arith.mulf %13, %17 : vector<8x1xf32>
    %cst_12 = arith.constant 0.001953125 : f32
    %19 = vector.broadcast %cst_12 : f32 to vector<8x1xf32>
    %20 = arith.mulf %16, %19 : vector<8x1xf32>
    %21 = arith.mulf %18, %18 : vector<8x1xf32>
    %22 = arith.subf %20, %21 : vector<8x1xf32>
    %23 = vector.broadcast %18 : vector<8x1xf32> to vector<8x512xf32>
    %24 = arith.subf %9, %23 : vector<8x512xf32>
    %cst_13 = arith.constant 9.99999974E-6 : f32
    %25 = vector.broadcast %cst_13 : f32 to vector<8x1xf32>
    %26 = arith.addf %22, %25 : vector<8x1xf32>
    %27 = math.rsqrt %26 : vector<8x1xf32>
    %28 = vector.broadcast %27 : vector<8x1xf32> to vector<8x512xf32>
    %29 = arith.mulf %24, %28 : vector<8x512xf32>
    %30 = vector.broadcast %10 : vector<1x512xf32> to vector<8x512xf32>
    %31 = arith.mulf %29, %30 : vector<8x512xf32>
    %32 = vector.broadcast %11 : vector<1x512xf32> to vector<8x512xf32>
    %33 = arith.addf %31, %32 : vector<8x512xf32>
    %34 = arith.truncf %33 : vector<8x512xf32> to vector<8x512xbf16>
    %c0_14 = arith.constant 0 : index
    %c0_15 = arith.constant 0 : index
    %35 = vector.load %arg9[%c0_14, %c0_15] : memref<512x256xbf16, #tpu.memory_space<vmem>>, vector<512x256xbf16>
    %cst_16 = arith.constant dense<0.000000e+00> : vector<8x256xf32>
    %36 = tpu.matmul %34, %35, %cst_16 {dimension_numbers = #tpu.dot_dimension_numbers<[1], [0], [0], [1], [0, 0, 1, 1], [], []>} : vector<8x512xbf16>, vector<512x256xbf16>, vector<8x256xf32> -> vector<8x256xf32>
    %c0_17 = arith.constant 0 : index
    %c0_18 = arith.constant 0 : index
    %37 = vector.load %arg11[%c0_17, %c0_18] : memref<1x640xf32, #tpu.memory_space<vmem>>, vector<1x256xf32>
    %38 = vector.broadcast %37 : vector<1x256xf32> to vector<8x256xf32>
    %39 = arith.addf %36, %38 : vector<8x256xf32>
    %cst_19 = arith.constant 0.000000e+00 : f32
    %40 = vector.broadcast %cst_19 : f32 to vector<8x256xf32>
    %41 = arith.maximumf %39, %40 : vector<8x256xf32>
    %42 = arith.truncf %41 : vector<8x256xf32> to vector<8x256xbf16>
    %c0_20 = arith.constant 0 : index
    %c0_21 = arith.constant 0 : index
    %43 = vector.load %arg10[%c0_20, %c0_21] : memref<512x128xbf16, #tpu.memory_space<vmem>>, vector<256x128xbf16>
    %cst_22 = arith.constant dense<0.000000e+00> : vector<8x128xf32>
    %44 = tpu.matmul %42, %43, %cst_22 {dimension_numbers = #tpu.dot_dimension_numbers<[1], [0], [0], [1], [0, 0, 1, 1], [], []>} : vector<8x256xbf16>, vector<256x128xbf16>, vector<8x128xf32> -> vector<8x128xf32>
    %c0_23 = arith.constant 0 : index
    %c256 = arith.constant 256 : index
    %45 = vector.load %arg11[%c0_23, %c256] : memref<1x640xf32, #tpu.memory_space<vmem>>, vector<1x128xf32>
    %46 = vector.broadcast %45 : vector<1x128xf32> to vector<8x128xf32>
    %47 = arith.addf %44, %46 : vector<8x128xf32>
    %cst_24 = arith.constant 0.000000e+00 : f32
    %48 = vector.broadcast %cst_24 : f32 to vector<8x128xf32>
    %49 = arith.maximumf %47, %48 : vector<8x128xf32>
    %50 = arith.truncf %49 : vector<8x128xf32> to vector<8x128xbf16>
    %c256_25 = arith.constant 256 : index
    %c0_26 = arith.constant 0 : index
    %51 = vector.load %arg10[%c256_25, %c0_26] : memref<512x128xbf16, #tpu.memory_space<vmem>>, vector<128x128xbf16>
    %cst_27 = arith.constant dense<0.000000e+00> : vector<8x128xf32>
    %52 = tpu.matmul %50, %51, %cst_27 {dimension_numbers = #tpu.dot_dimension_numbers<[1], [0], [0], [1], [0, 0, 1, 1], [], []>} : vector<8x128xbf16>, vector<128x128xbf16>, vector<8x128xf32> -> vector<8x128xf32>
    %c0_28 = arith.constant 0 : index
    %c384 = arith.constant 384 : index
    %53 = vector.load %arg11[%c0_28, %c384] : memref<1x640xf32, #tpu.memory_space<vmem>>, vector<1x128xf32>
    %54 = vector.broadcast %53 : vector<1x128xf32> to vector<8x128xf32>
    %55 = arith.addf %52, %54 : vector<8x128xf32>
    %cst_29 = arith.constant 0.000000e+00 : f32
    %56 = vector.broadcast %cst_29 : f32 to vector<8x128xf32>
    %57 = arith.maximumf %55, %56 : vector<8x128xf32>
    %58 = arith.truncf %57 : vector<8x128xf32> to vector<8x128xbf16>
    %c384_30 = arith.constant 384 : index
    %c0_31 = arith.constant 0 : index
    %59 = vector.load %arg10[%c384_30, %c0_31] : memref<512x128xbf16, #tpu.memory_space<vmem>>, vector<128x128xbf16>
    %cst_32 = arith.constant dense<0.000000e+00> : vector<8x128xf32>
    %60 = tpu.matmul %58, %59, %cst_32 {dimension_numbers = #tpu.dot_dimension_numbers<[1], [0], [0], [1], [0, 0, 1, 1], [], []>} : vector<8x128xbf16>, vector<128x128xbf16>, vector<8x128xf32> -> vector<8x128xf32>
    %c0_33 = arith.constant 0 : index
    %c512 = arith.constant 512 : index
    %61 = vector.load %arg11[%c0_33, %c512] : memref<1x640xf32, #tpu.memory_space<vmem>>, vector<1x128xf32>
    %62 = vector.broadcast %61 : vector<1x128xf32> to vector<8x128xf32>
    %63 = arith.addf %60, %62 : vector<8x128xf32>
    %c0_34 = arith.constant 0 : index
    %c0_35 = arith.constant 0 : index
    %c0_36 = arith.constant 0 : index
    %64 = vector.load %arg13[%c0_34, %c0_35, %c0_36] : memref<1x8x128xf32, #tpu.memory_space<vmem>>, vector<1x8x128xf32>
    %65 = vector.shape_cast %64 : vector<1x8x128xf32> to vector<8x128xf32>
    %66 = vector.shape_cast %63 : vector<8x128xf32> to vector<1x8x128xf32>
    tpu.vector_store %arg13[%c0_34, %c0_35, %c0_36], %66 {strides = array<i32>} : memref<1x8x128xf32, #tpu.memory_space<vmem>>, vector<1x8x128xf32>,
    return
  }
  func.func @transform_0(%arg0: i32) -> (i32, i32) {
    %c0_i32 = arith.constant 0 : i32
    %c0_i32_0 = arith.constant 0 : i32
    %c0_i32_1 = arith.constant 0 : i32
    return %c0_i32, %c0_i32_0 : i32, i32
  }
  func.func @transform_1(%arg0: i32) -> (i32, i32) {
    %c0_i32 = arith.constant 0 : i32
    %c0_i32_0 = arith.constant 0 : i32
    %c0_i32_1 = arith.constant 0 : i32
    return %c0_i32, %c0_i32_0 : i32, i32
  }
  func.func @transform_2(%arg0: i32) -> (i32, i32) {
    %c0_i32 = arith.constant 0 : i32
    %c0_i32_0 = arith.constant 0 : i32
    %c0_i32_1 = arith.constant 0 : i32
    return %c0_i32, %c0_i32_0 : i32, i32
  }
  func.func @transform_3(%arg0: i32) -> (i32, i32) {
    %c0_i32 = arith.constant 0 : i32
    %c0_i32_0 = arith.constant 0 : i32
    %c0_i32_1 = arith.constant 0 : i32
    return %c0_i32, %c0_i32_0 : i32, i32
  }
  func.func @transform_4(%arg0: i32) -> (i32, i32) {
    %c0_i32 = arith.constant 0 : i32
    %c0_i32_0 = arith.constant 0 : i32
    %c0_i32_1 = arith.constant 0 : i32
    return %c0_i32, %c0_i32_0 : i32, i32
  }
  func.func @transform_5(%arg0: i32) -> (i32, i32) {
    %c0_i32 = arith.constant 0 : i32
    %c0_i32_0 = arith.constant 0 : i32
    %c0_i32_1 = arith.constant 0 : i32
    return %c0_i32, %c0_i32_0 : i32, i32
  }
  func.func @transform_6(%arg0: i32) -> (i32, i32) {
    %c0_i32 = arith.constant 0 : i32
    %c0_i32_0 = arith.constant 0 : i32
    %c0_i32_1 = arith.constant 0 : i32
    return %c0_i32, %c0_i32_0 : i32, i32
  }
  func.func @transform_7(%arg0: i32) -> (i32, i32) {
    %c0_i32 = arith.constant 0 : i32
    %c0_i32_0 = arith.constant 0 : i32
    %c0_i32_1 = arith.constant 0 : i32
    return %c0_i32, %c0_i32_0 : i32, i32
  }
  func.func @transform_8(%arg0: i32) -> (i32, i32) {
    %c0_i32 = arith.constant 0 : i32
    %c0_i32_0 = arith.constant 0 : i32
    %c0_i32_1 = arith.constant 0 : i32
    return %c0_i32, %c0_i32_0 : i32, i32
  }
  func.func @transform_9(%arg0: i32) -> (i32, i32) {
    %c0_i32 = arith.constant 0 : i32
    %c0_i32_0 = arith.constant 0 : i32
    %c0_i32_1 = arith.constant 0 : i32
    return %c0_i32, %c0_i32_0 : i32, i32
  }
  func.func @transform_10(%arg0: i32) -> (i32, i32) {
    %c0_i32 = arith.constant 0 : i32
    %c0_i32_0 = arith.constant 0 : i32
    %c0_i32_1 = arith.constant 0 : i32
    return %c0_i32, %c0_i32_0 : i32, i32
  }
  func.func @transform_11(%arg0: i32) -> (i32, i32, i32) {
    %c0_i32 = arith.constant 0 : i32
    %c0_i32_0 = arith.constant 0 : i32
    %c0_i32_1 = arith.constant 0 : i32
    return %arg0, %c0_i32, %c0_i32_0 : i32, i32, i32
  }
  func.func @transform_12(%arg0: i32) -> (i32, i32, i32) {
    %c0_i32 = arith.constant 0 : i32
    %c0_i32_0 = arith.constant 0 : i32
    %c0_i32_1 = arith.constant 0 : i32
    return %arg0, %c0_i32, %c0_i32_0 : i32, i32, i32
  }
}

</mosaic_0001>

<bundles_post_ra>
// kernel: network_forward.1
= control target key start
LH: loop header
LB: loop body
LE: loop exit
PB: predicated region body
PF: predicated region fallthrough
CT: control target
= control target key end

     0   :  { %s3694_s0 = inlined_call_operand.hbm [shape: f32[8,192], index: 0, kind: input, shape index: {}]   ;;  %s3695_s1 = inlined_call_operand.hbm [shape: f32[8,512], index: 1, kind: input, shape index: {}]   ;;  %s3696_s2 = inlined_call_operand.hbm [shape: f32[8,512], index: 2, kind: input, shape index: {}]   ;;  %s3697_s3 = inlined_call_operand.hbm [shape: f32[2,192], index: 3, kind: input, shape index: {}]   ;;  %s3698_s4 = inlined_call_operand.hbm [shape: bf16[192,256], index: 4, kind: input, shape index: {}]   ;;  %s3699_s5 = inlined_call_operand.hbm [shape: bf16[512,128], index: 5, kind: input, shape index: {}]   ;;  %s3700_s6 = inlined_call_operand.vmem [shape: f32[1,640], index: 6, kind: input, shape index: {}]   ;;  %s3701_s7 = inlined_call_operand.vmem [shape: f32[2,512], index: 7, kind: input, shape index: {}]   ;;  %s3702_s8 = inlined_call_operand.hbm [shape: bf16[512,256], index: 8, kind: input, shape index: {}]   ;;  %s3703_s9 = inlined_call_operand.hbm [shape: bf16[512,128], index: 9, kind: input, shape index: {}]   ;;  %s3704_s10 = inlined_call_operand.vmem [shape: f32[1,640], index: 10, kind: input, shape index: {}]   ;;  %s3705_s11 = inlined_call_operand.vmem [shape: f32[2,8,128], index: 11, kind: output, shape index: {0}]   ;;  %s3706_s12 = inlined_call_operand.vmem [shape: f32[2,8,128], index: 12, kind: output, shape index: {1}]  }
   0x1   :  { %3711 = sst [smem:[#allocation20_spill]] %s3694_s0 }
   0x2   :  { %3712 = sst [smem:[#allocation21_spill]] %s3695_s1 }
   0x3   :  { %3713 = sst [smem:[#allocation22_spill]] %s3696_s2 }
   0x4   :  { %18 = vsyncpa [#allocation3], 0 }
   0x5   :  { %19 = vsyncpa [#allocation5], 0 }
   0x6   :  { %20 = vsyncpa [#allocation8], 0 }
   0x7   :  { %21 = vsyncpa [#allocation11], 0 }
   0x8   :  { %22 = vsyncpa [#allocation14], 0  ;;  %s3301_s21 = smov 0  }
   0x9 LB: > { %s3219_s22 = smov [#allocation4]   ;;  %s3307_s24 = sadd.s32 4294967295, %s3217_s21   ;;  %s3217_s21 = sphi %s3301_s21, %s28_s21  }
   0xa   : > { %s340_s23 = sshll.u32 %s3219_s22, 4  ;;  %p2319_p0 = scmp.ge.s32.totalorder %s3217_s21, 1  ;;  %s3313_s23 = int_to_ptr.vmem [resolvable:$true] %s340_s23 }
   0xb   : > { %p316_p1 = scmp.lt.s32.totalorder %s3217_s21, 3  ;;  %p3707_p3 = scmp.eq.s32.totalorder %s3307_s24, 0 }
   0xc   : > { %s3220_s26 = smov [#allocation7]   ;;  %s3221_s28 = smov [#allocation10]  }
   0xd   : > { %p3315_p4 = pnand %p2319_p0, %p316_p1  ;;  %s362_s27 = sshll.u32 %s3220_s26, 4  ;;  %s3321_s27 = int_to_ptr.vmem [resolvable:$true] %s362_s27 }
   0xe   : > { %s385_s29 = sshll.u32 %s3221_s28, 4  ;;  %s3222_s13 = smov [#allocation2]   ;;  %s3329_s29 = int_to_ptr.vmem [resolvable:$true] %s385_s29 }
   0xf   : > { %s3714_s25 = scalar_select %p3315_p4, 1, 0 }
  0x10   : > { %p2701_p5 = pneg %p3315_p4  ;;  %s3331_s14 = sshll.u32 %s3222_s13, 4  ;;  %s330_s14 = int_to_ptr.vmem [resolvable:$true] %s3331_s14 }
  0x11   : > { %s3716_s1 = sld [smem:[#allocation21_spill]] }
  0x12   : > { %p3325_p6 = pnand %p3707_p3, %p2701_p5 }
  0x14   : > { %p3341_p8 = pneg %p3325_p6 }
  0x17   : > { %s2967_s17 = scalar_lea.hbm %s3716_s1, 512 }
  0x18   : > { %p2968_p7 = scmp.ne.s32.totalorder %s3716_s1, %s2967_s17  ;;  %p2974_p11 = scmp.lt.u32.totalorder %s2967_s17, %s3716_s1 }
  0x1a   : > { %p2970_p9 = pnand %p3341_p8, %p2968_p7 }
  0x1c   : > { %p2971_p10 = pneg %p2970_p9 }
  0x1e   : > { %p2976_p12 = pnand %p2974_p11, %p2971_p10 }
  0x20   : > { %2979 = shalt.err (!%p2976_p12)
}
  0x21   : > { %s2980_s28 = scalar_lea.vmem %s3313_s23, 512  ;;  %p2988_p5 = scmp.lt.s32.totalorder %s3313_s23, %s3313_s23 }
  0x22   : > { %p2981_p13 = scmp.ne.s32.totalorder %s3313_s23, %s2980_s28  ;;  %p2989_p2 = scmp.lt.s32.totalorder %s2980_s28, %s2980_s28 }
  0x24   : > { %p2983_p0 = pnand %p2981_p13, %p3341_p8  ;;  %p2990_p7 = por %p2989_p2, %p2988_p5 }
  0x26   : > { %p2984_p1 = pneg %p2983_p0 }
  0x28   : > { %p2991_p9 = pnand %p2990_p7, %p2984_p1 }
  0x2a   : > { %2994 = shalt.err (!%p2991_p9)
}
  0x2b   : > { %2707 = dma.hbm_to_vmem [thread:$0]  (!%p3325_p6), %s3716_s1, 512, %s3313_s23, [#allocation5]  }
  0x2c   : > { %s2995_s18 = scalar_lea.hbm %s3697_s3, 64 }
  0x2d   : > { %p2996_p10 = scmp.ne.s32.totalorder %s3697_s3, %s2995_s18  ;;  %p3002_p12 = scmp.lt.u32.totalorder %s2995_s18, %s3697_s3 }
  0x2f   : > { %p2998_p2 = pnand %p2996_p10, %p3341_p8 }
  0x31   : > { %p2999_p11 = pneg %p2998_p2 }
  0x33   : > { %p3004_p13 = pnand %p3002_p12, %p2999_p11 }
  0x35   : > { %3007 = shalt.err (!%p3004_p13)
}
  0x36   : > { %s3008_s23 = scalar_lea.vmem %s3321_s27, 64  ;;  %p3016_p7 = scmp.lt.s32.totalorder %s3321_s27, %s3321_s27 }
  0x37   : > { %p3009_p0 = scmp.ne.s32.totalorder %s3321_s27, %s3008_s23  ;;  %p3017_p9 = scmp.lt.s32.totalorder %s3008_s23, %s3008_s23 }
  0x39   : > { %p3011_p1 = pnand %p3009_p0, %p3341_p8  ;;  %p3018_p10 = por %p3017_p9, %p3016_p7 }
  0x3b   : > { %p3012_p5 = pneg %p3011_p1 }
  0x3d   : > { %p3019_p2 = pnand %p3018_p10, %p3012_p5 }
  0x3f   : > { %3022 = shalt.err (!%p3019_p2)
}
  0x40   : > { %2713 = dma.hbm_to_vmem [thread:$0]  (!%p3325_p6), %s3697_s3, 64, %s3321_s27, [#allocation8]  }
  0x41   : > { %s3023_s18 = scalar_lea.hbm %s3699_s5, 4096 }
  0x42   : > { %p3024_p11 = scmp.ne.s32.totalorder %s3699_s5, %s3023_s18  ;;  %p3030_p0 = scmp.lt.u32.totalorder %s3023_s18, %s3699_s5 }
  0x44   : > { %p3026_p12 = pnand %p3024_p11, %p3341_p8 }
  0x46   : > { %p3027_p13 = pneg %p3026_p12 }
  0x48   : > { %p3032_p1 = pnand %p3030_p0, %p3027_p13 }
  0x4a   : > { %3035 = shalt.err (!%p3032_p1)
}
  0x4b   : > { %s3036_s27 = scalar_lea.vmem %s3329_s29, 4096  ;;  %p3044_p10 = scmp.lt.s32.totalorder %s3329_s29, %s3329_s29 }
  0x4c   : > { %p3037_p5 = scmp.ne.s32.totalorder %s3329_s29, %s3036_s27  ;;  %p3045_p2 = scmp.lt.s32.totalorder %s3036_s27, %s3036_s27 }
  0x4e   : > { %p3039_p7 = pnand %p3037_p5, %p3341_p8  ;;  %p3046_p11 = por %p3045_p2, %p3044_p10 }
  0x50   : > { %p3040_p9 = pneg %p3039_p7 }
  0x52   : > { %p3047_p12 = pnand %p3046_p11, %p3040_p9 }
  0x54   : > { %3050 = shalt.err (!%p3047_p12)
}
  0x55   : > { %s3709_s23 = smov 64   ;;  %s3710_s13 = smov 4  }
  0x56   : > { %2719 = dma.hbm_to_vmem [thread:$0]  (!%p3325_p6), %s3699_s5, 4096, %s3329_s29, [#allocation11], %s3709_s23, %s3709_s23, %s3710_s13  }
  0x57   : > { %s3718_s0 = sld [smem:[#allocation20_spill]] }
  0x5d   : > { %s3051_s19 = scalar_lea.hbm %s3718_s0, 256 }
  0x5e   : > { %p3052_p13 = scmp.ne.s32.totalorder %s3718_s0, %s3051_s19  ;;  %p3058_p5 = scmp.lt.u32.totalorder %s3051_s19, %s3718_s0 }
  0x60   : > { %p3054_p0 = pnand %p3052_p13, %p3341_p8 }
  0x62   : > { %p3055_p1 = pneg %p3054_p0 }
  0x64   : > { %p3060_p7 = pnand %p3058_p5, %p3055_p1 }
  0x66   : > { %3063 = shalt.err (!%p3060_p7)
}
  0x67   : > { %s3064_s15 = scalar_lea.vmem %s330_s14, 256  ;;  %p3072_p11 = scmp.lt.s32.totalorder %s330_s14, %s330_s14 }
  0x68   : > { %p3065_p9 = scmp.ne.s32.totalorder %s330_s14, %s3064_s15  ;;  %p3073_p12 = scmp.lt.s32.totalorder %s3064_s15, %s3064_s15 }
  0x6a   : > { %p3067_p10 = pnand %p3065_p9, %p3341_p8  ;;  %p3074_p3 = por %p3073_p12, %p3072_p11 }
  0x6c   : > { %p3068_p2 = pneg %p3067_p10 }
  0x6e   : > { %p3075_p4 = pnand %p3074_p3, %p3068_p2 }
  0x70   : > { %3078 = shalt.err (!%p3075_p4)
}
  0x71   : > { %2704 = dma.hbm_to_vmem [thread:$0]  (!%p3325_p6), %s3718_s0, 256, %s330_s14, [#allocation3]  }
  0x72   : > { %s3225_s17 = smov [#allocation6]   ;;  %s3226_s19 = smov [#allocation9]  }
  0x73   : > { %s351_s18 = sshll.u32 %s3225_s17, 4  ;;  %s372_s22 = sshll.u32 %s3226_s19, 4  ;;  %s352_s18 = int_to_ptr.vmem [resolvable:$true] %s351_s18  ;;  %s373_s22 = int_to_ptr.vmem [resolvable:$true] %s372_s22 }
  0x74   : > { %s3719_s2 = sld [smem:[#allocation22_spill]] }
  0x7a   : > { %s3079_s27 = scalar_lea.hbm %s3719_s2, 512 }
  0x7b   : > { %p3080_p3 = scmp.ne.s32.totalorder %s3719_s2, %s3079_s27  ;;  %p3086_p0 = scmp.lt.u32.totalorder %s3079_s27, %s3719_s2 }
  0x7d   : > { %p3082_p4 = pnand %p3080_p3, %p3341_p8 }
  0x7f   : > { %p3083_p13 = pneg %p3082_p4 }
  0x81   : > { %p3088_p1 = pnand %p3086_p0, %p3083_p13 }
  0x83   : > { %3091 = shalt.err (!%p3088_p1)
}
  0x84   : > { %s3092_s14 = scalar_lea.vmem %s352_s18, 512  ;;  %p3100_p10 = scmp.lt.s32.totalorder %s352_s18, %s352_s18 }
  0x85   : > { %p3093_p5 = scmp.ne.s32.totalorder %s352_s18, %s3092_s14  ;;  %p3101_p2 = scmp.lt.s32.totalorder %s3092_s14, %s3092_s14 }
  0x87   : > { %p3095_p7 = pnand %p3093_p5, %p3341_p8  ;;  %p3102_p11 = por %p3101_p2, %p3100_p10 }
  0x89   : > { %p3096_p9 = pneg %p3095_p7 }
  0x8b   : > { %p3103_p12 = pnand %p3102_p11, %p3096_p9 }
  0x8d   : > { %3106 = shalt.err (!%p3103_p12)
}
  0x8e   : > { %2710 = dma.hbm_to_vmem [thread:$0]  (!%p3325_p6), %s3719_s2, 512, %s352_s18, [#allocation5]  }
  0x8f   : > { %s3107_s19 = scalar_lea.hbm %s3698_s4, 3072 }
  0x90   : > { %p3108_p3 = scmp.ne.s32.totalorder %s3698_s4, %s3107_s19  ;;  %p3114_p0 = scmp.lt.u32.totalorder %s3107_s19, %s3698_s4 }
  0x92   : > { %p3110_p4 = pnand %p3108_p3, %p3341_p8 }
  0x94   : > { %p3111_p13 = pneg %p3110_p4 }
  0x96   : > { %p3116_p1 = pnand %p3114_p0, %p3111_p13 }
  0x98   : > { %3119 = shalt.err (!%p3116_p1)
}
  0x99   : > { %s3120_s29 = scalar_lea.vmem %s373_s22, 3072  ;;  %p3128_p10 = scmp.lt.s32.totalorder %s373_s22, %s373_s22 }
  0x9a   : > { %p3121_p5 = scmp.ne.s32.totalorder %s373_s22, %s3120_s29  ;;  %p3129_p2 = scmp.lt.s32.totalorder %s3120_s29, %s3120_s29 }
  0x9c   : > { %p3123_p7 = pnand %p3121_p5, %p3341_p8  ;;  %p3130_p11 = por %p3129_p2, %p3128_p10 }
  0x9e   : > { %p3124_p9 = pneg %p3123_p7 }
  0xa0   : > { %p3131_p12 = pnand %p3130_p11, %p3124_p9 }
  0xa2   : > { %3134 = shalt.err (!%p3131_p12)
}
  0xa3   : > { %s3227_s18 = smov 128   ;;  %s3228_s14 = smov 8  }
  0xa4   : > { %2716 = dma.hbm_to_vmem [thread:$0]  (!%p3325_p6), %s3698_s4, 3072, %s373_s22, [#allocation8], %s3227_s18, %s3227_s18, %s3228_s14  }
  0xa5   : > { %s3229_s13 = smov [#allocation12]   ;;  %s3230_s19 = smov [#allocation13]  }
  0xa6   : > { %s404_s17 = sshll.u32 %s3229_s13, 4  ;;  %s417_s26 = sshll.u32 %s3230_s19, 4  ;;  %s405_s17 = int_to_ptr.vmem [resolvable:$true] %s404_s17  ;;  %s418_s26 = int_to_ptr.vmem [resolvable:$true] %s417_s26 }
  0xa7   : > { %s3135_s15 = scalar_lea.hbm %s3702_s8, 8192 }
  0xa8   : > { %p3136_p3 = scmp.ne.s32.totalorder %s3702_s8, %s3135_s15  ;;  %p3142_p0 = scmp.lt.u32.totalorder %s3135_s15, %s3702_s8 }
  0xaa   : > { %p3138_p4 = pnand %p3136_p3, %p3341_p8 }
  0xac   : > { %p3139_p13 = pneg %p3138_p4 }
  0xae   : > { %p3144_p1 = pnand %p3142_p0, %p3139_p13 }
  0xb0   : > { %3147 = shalt.err (!%p3144_p1)
}
  0xb1   : > { %s3148_s22 = scalar_lea.vmem %s405_s17, 8192  ;;  %p3156_p10 = scmp.lt.s32.totalorder %s405_s17, %s405_s17 }
  0xb2   : > { %p3149_p5 = scmp.ne.s32.totalorder %s405_s17, %s3148_s22  ;;  %p3157_p2 = scmp.lt.s32.totalorder %s3148_s22, %s3148_s22 }
  0xb4   : > { %p3151_p7 = pnand %p3149_p5, %p3341_p8  ;;  %p3158_p11 = por %p3157_p2, %p3156_p10 }
  0xb6   : > { %p3152_p9 = pneg %p3151_p7 }
  0xb8   : > { %p3159_p12 = pnand %p3158_p11, %p3152_p9 }
  0xba   : > { %3162 = shalt.err (!%p3159_p12)
}
  0xbb   : > { %2722 = dma.hbm_to_vmem [thread:$0]  (!%p3325_p6), %s3702_s8, 8192, %s405_s17, [#allocation11], %s3227_s18, %s3227_s18, %s3228_s14  }
  0xbc   : > { %s3163_s16 = scalar_lea.hbm %s3703_s9, 4096 }
  0xbd   : > { %p3164_p3 = scmp.ne.s32.totalorder %s3703_s9, %s3163_s16  ;;  %p3170_p0 = scmp.lt.u32.totalorder %s3163_s16, %s3703_s9 }
  0xbf   : > { %p3166_p4 = pnand %p3164_p3, %p3341_p8 }
  0xc1   : > { %p3167_p13 = pneg %p3166_p4 }
  0xc3   : > { %p3172_p1 = pnand %p3170_p0, %p3167_p13 }
  0xc5   : > { %3175 = shalt.err (!%p3172_p1)
}
  0xc6   : > { %s3176_s15 = scalar_lea.vmem %s418_s26, 4096  ;;  %p3184_p10 = scmp.lt.s32.totalorder %s418_s26, %s418_s26 }
  0xc7   : > { %p3177_p5 = scmp.ne.s32.totalorder %s418_s26, %s3176_s15  ;;  %p3185_p2 = scmp.lt.s32.totalorder %s3176_s15, %s3176_s15 }
  0xc9   : > { %p3179_p7 = pnand %p3177_p5, %p3341_p8  ;;  %p3186_p11 = por %p3185_p2, %p3184_p10 }
  0xcb   : > { %p3180_p9 = pneg %p3179_p7 }
  0xcd   : > { %p3187_p12 = pnand %p3186_p11, %p3180_p9 }
  0xcf   : > { %3190 = shalt.err (!%p3187_p12)
}
  0xd0   : > { %s3720_s18 = smov 4   ;;  %s3721_s14 = smov 64  }
  0xd1   : > { %2725 = dma.hbm_to_vmem [thread:$0]  (!%p3325_p6), %s3703_s9, 4096, %s418_s26, [#allocation14], %s3721_s14, %s3721_s14, %s3720_s18  }
  0xd2   : > { %p3722_p3 = scmp.ne.s32.totalorder %s3714_s25, 0 }
  0xd3   : > { %p3723_p8 = scmp.eq.s32.totalorder (!%p3722_p3), %s3307_s24, 0 }
  0xd4   : > { %436 = sbr.rel (%p3722_p3) target bundleno = 2417 (0x971), region = 64 }
  0xdb   : > { %3196 = dma.done.wait (%p3723_p8), [#allocation3], 256   ;;  %p3724_p4 = pmov %p3723_p8 }
  0xdd   : > { %3198 = vsyncadd (%p3724_p4), [#allocation3], 4294967040  ;;  %p3725_p13 = pmov %p3724_p4 }
  0xde   : > { %p3726_p0 = pmov %p3724_p4 }
  0xdf   : > { %3200 = dma.done.wait (%p3725_p13), [#allocation5], 1024  }
  0xe0   : > { %3202 = vsyncadd (%p3726_p0), [#allocation5], 4294966272  ;;  %p3727_p1 = pmov %p3726_p0 }
  0xe1   : > { %p3728_p6 = pmov %p3726_p0 }
  0xe2   : > { %3204 = dma.done.wait (%p3727_p1), [#allocation8], 3136  }
  0xe3   : > { %3206 = vsyncadd (%p3728_p6), [#allocation8], 4294964160  ;;  %p3729_p5 = pmov %p3726_p0 }
  0xe4   : > { %p3730_p7 = pmov %p3726_p0 }
  0xe5   : > { %3208 = dma.done.wait (%p3729_p5), [#allocation11], 12288  }
  0xe6   : > { %3210 = vsyncadd (%p3730_p7), [#allocation11], 4294955008  ;;  %p3731_p9 = pmov %p3726_p0 }
  0xe7   : > { %p3732_p10 = pmov %p3726_p0 }
  0xe8   : > { %3212 = dma.done.wait (%p3731_p9), [#allocation14], 4096  }
  0xe9   : > { %3214 = vsyncadd (%p3732_p10), [#allocation14], 4294963200  ;;  %p504_p2 = scmp.lt.s32.totalorder %s3307_s24, 1  ;;  %p3733_p11 = scmp.ne.s32.totalorder %s3307_s24, 0 }
  0xea   : > { %v3541_v0 = vld [vmem:[#allocation2] sm:$0xff] (!%p3733_p11)  ;;  %v3543_v1 = vld [vmem:[#allocation2 + $0x8] sm:$0xff] (!%p3733_p11)  ;;  %vm522_vm0 = vcmask (!%p3733_p11), 523264   ;;  %v2769_v6 = vld [vmem:[#allocation9] ss:$8 sps:$4 sm:$0xff] (!%p3733_p11)   ;;  %v544_v50 = vlaneseq (!%p3733_p11)  ;;  %vm3232_vm1 = vmmov (!%p3733_p11), 0  }
  0xeb   : > { %s505_s25 = scalar_select %p504_p2, %s3307_s24, 1 }
  0xec   : > { %516 = sbr.rel (%p3733_p11) target bundleno = 1285 (0x505), region = 100  ;;  %v523_v2 = vsel (!%p3733_p11), %vm522_vm0, %v3543_v1, 0.0  ;;  %v527_v3 = vmul.f32 (!%p3733_p11), %v3541_v0, %v3541_v0  ;;  %v528_v4 = vmul.f32 (!%p3733_p11), %v3543_v1, %v3543_v1  ;;  %v2767_v5 = vld [vmem:[#allocation9 + $0x4] ss:$8 sps:$4 sm:$0xff] (!%p3733_p11)   ;;  %v2770_v8 = vld [vmem:[#allocation9 + $0x14] ss:$8 sps:$4 sm:$0xff] (!%p3733_p11)  }
  0xed   : > { %s2337_s30 = sshll.u32 %s505_s25, 3  ;;  %v524_v7 = vadd.f32 (!%p3733_p11), %v523_v2, %v3541_v0  ;;  %730 = vmatprep.subr.bf16.mxu0 (!%p3733_p11), %v2767_v5  ;;  %v2772_v11 = vld [vmem:[#allocation9 + $0x10] ss:$8 sps:$4 sm:$0xff] (!%p3733_p11)   ;;  %v2773_v12 = vld [vmem:[#allocation9 + $0x24] ss:$8 sps:$4 sm:$0xff] (!%p3733_p11)   ;;  %v545_v52 = vshrl.u32 (!%p3733_p11), %v544_v50, 7 }
  0xee   : > { %s3532_s22 = scalar_lea.vmem %s3705_s11, %s2337_s30  ;;  %s3537_s1 = scalar_lea.vmem %s3706_s12, %s2337_s30  ;;  %v529_v9 = vsel (!%p3733_p11), %vm522_vm0, %v528_v4, 0.0  ;;  %731 = vmatpush1.bf16.msra.mxu0 (!%p3733_p11), %v2769_v6  ;;  %v2775_v13 = vld [vmem:[#allocation9 + $0x20] ss:$8 sps:$4 sm:$0xff] (!%p3733_p11)   ;;  %v2776_v14 = vld [vmem:[#allocation9 + $0x34] ss:$8 sps:$4 sm:$0xff] (!%p3733_p11)  }
  0xef   : > { %525 = vadd.xlane.f32.xlu0 (!%p3733_p11), %v524_v7  ;;  %v530_v10 = vadd.f32 (!%p3733_p11), %v529_v9, %v527_v3  ;;  %732 = vmatprep.subr.bf16.mxu0 (!%p3733_p11), %v2770_v8  ;;  %v2778_v15 = vld [vmem:[#allocation9 + $0x30] ss:$8 sps:$4 sm:$0xff] (!%p3733_p11)   ;;  %v2779_v16 = vld [vmem:[#allocation9 + $0x44] ss:$8 sps:$4 sm:$0xff] (!%p3733_p11)   ;;  %v2781_v17 = vld [vmem:[#allocation9 + $0x40] ss:$8 sps:$4 sm:$0xff] (!%p3733_p11)  }
  0xf0   : > { %v2782_v18 = vld [vmem:[#allocation9 + $0x54] ss:$8 sps:$4 sm:$0xff] (!%p3733_p11)   ;;  %v2784_v19 = vld [vmem:[#allocation9 + $0x50] ss:$8 sps:$4 sm:$0xff] (!%p3733_p11)   ;;  %v2785_v20 = vld [vmem:[#allocation9 + $0x64] ss:$8 sps:$4 sm:$0xff] (!%p3733_p11)  }
  0xf1   : > { %v2787_v21 = vld [vmem:[#allocation9 + $0x60] ss:$8 sps:$4 sm:$0xff] (!%p3733_p11)   ;;  %v2788_v22 = vld [vmem:[#allocation9 + $0x74] ss:$8 sps:$4 sm:$0xff] (!%p3733_p11)   ;;  %v2790_v23 = vld [vmem:[#allocation9 + $0x70] ss:$8 sps:$4 sm:$0xff] (!%p3733_p11)  }
  0xf2   : > { %733 = vmatpush1.bf16.msra.mxu0 (!%p3733_p11), %v2772_v11  ;;  %v2791_v24 = vld [vmem:[#allocation9 + $0x84] ss:$8 sps:$4 sm:$0xff] (!%p3733_p11)   ;;  %v2793_v25 = vld [vmem:[#allocation9 + $0x80] ss:$8 sps:$4 sm:$0xff] (!%p3733_p11)   ;;  %v2794_v26 = vld [vmem:[#allocation9 + $0x94] ss:$8 sps:$4 sm:$0xff] (!%p3733_p11)  }
  0xf3   : > { %531 = vadd.xlane.f32.xlu0 %v530_v10  ;;  %734 = vmatprep.subr.bf16.mxu0 %v2773_v12  ;;  %v2796_v27 = vld [vmem:[#allocation9 + $0x90] ss:$8 sps:$4 sm:$0xff]   ;;  %v2797_v28 = vld [vmem:[#allocation9 + $0xa4] ss:$8 sps:$4 sm:$0xff]   ;;  %v2799_v29 = vld [vmem:[#allocation9 + $0xa0] ss:$8 sps:$4 sm:$0xff]  }
  0xf4   : > { %v2800_v30 = vld [vmem:[#allocation9 + $0xb4] ss:$8 sps:$4 sm:$0xff]   ;;  %v2802_v31 = vld [vmem:[#allocation9 + $0xb0] ss:$8 sps:$4 sm:$0xff]   ;;  %v2803_v32 = vld [vmem:[#allocation10 + $0x40] sm:$0xff]   ;;  %v546_v53 = vsub.s32 0, %v545_v52 }
  0xf5   : > { %v2804_v33 = vld [vmem:[#allocation10] sm:$0xff]   ;;  %v2805_v34 = vld [vmem:[#allocation10 + $0x48] sm:$0xff]   ;;  %2503 = vmatprep.subr.bf16.mxu1 %v2803_v32  ;;  %v2807_v36 = vld [vmem:[#allocation10 + $0x50] sm:$0xff]   ;;  %v550_v54 = vsub.s32 1, %v545_v52  ;;  %v3231_v12 = vmov 0.0  }
  0xf6   : > { %735 = vmatpush1.bf16.msra.mxu0 %v2775_v13  ;;  %2504 = vmatpush3.bf16.msra.mxu1 %v2804_v33  ;;  %v2806_v35 = vld [vmem:[#allocation10 + $0x8] sm:$0xff]   ;;  %v2808_v37 = vld [vmem:[#allocation10 + $0x10] sm:$0xff]   ;;  %v2809_v38 = vld [vmem:[#allocation10 + $0x58] sm:$0xff]  }
  0xf7   : > { %736 = vmatprep.subr.bf16.mxu0 %v2776_v14  ;;  %2505 = vmatprep.subr.bf16.mxu1 %v2805_v34  ;;  %v2810_v39 = vld [vmem:[#allocation10 + $0x18] sm:$0xff]   ;;  %v2811_v40 = vld [vmem:[#allocation10 + $0x60] sm:$0xff]   ;;  %v2813_v42 = vld [vmem:[#allocation10 + $0x68] sm:$0xff]  }
  0xf8   : > { %v2812_v41 = vld [vmem:[#allocation10 + $0x20] sm:$0xff]   ;;  %v2814_v43 = vld [vmem:[#allocation10 + $0x28] sm:$0xff]   ;;  %v519_v55 = vld [vmem:[#allocation7] ss:$2 sm:$0x3] }
  0xf9   : > { %v521_v56 = vld [vmem:[#allocation7 + $0x1] ss:$2 sm:$0x3]  ;;  %v547_v59 = vrot.slane %v519_v55, %v546_v53  ;;  %v551_v60 = vrot.slane %v519_v55, %v550_v54  ;;  %v2815_v10 = vld [vmem:[#allocation10 + $0x70] sm:$0xff]   ;;  %v595_v13 = vld [vmem:[%s3700_s6] sm:$0x3] }
  0xfa   : > { %737 = vmatpush1.bf16.msra.mxu0 %v2778_v15  ;;  %2506 = vmatpush3.bf16.msra.mxu1 %v2806_v35  ;;  %v560_v63 = vrot.slane %v521_v56, %v546_v53  ;;  %v564_v2 = vrot.slane %v521_v56, %v550_v54  ;;  %v2818_v11 = vld [vmem:[#allocation10 + $0x38] sm:$0xff]   ;;  %v600_v14 = vrot.slane %v595_v13, %v546_v53  ;;  %v2825_v32 = vld [vmem:[#allocation10 + $0xb0] sm:$0xff]   ;;  %v2827_v34 = vld [vmem:[#allocation10 + $0xc0] sm:$0xff]  }
  0xfb   : > { %738 = vmatprep.subr.bf16.mxu0 %v2779_v16  ;;  %2507 = vmatprep.subr.bf16.mxu1 %v2807_v36  ;;  %v604_v15 = vrot.slane %v595_v13, %v550_v54  ;;  %v2826_v33 = vld [vmem:[#allocation10 + $0xb8] sm:$0xff]   ;;  %v2828_v35 = vld [vmem:[#allocation10 + $0xc8] sm:$0xff]   ;;  %v2829_v36 = vld [vmem:[#allocation10 + $0xd0] sm:$0xff]  }
  0xfc   : > { %v2834_v50 = vld [vmem:[#allocation10 + $0xf8] sm:$0xff]  }
  0xfe   : > { %739 = vmatpush1.bf16.msra.mxu0 %v2781_v17  ;;  %2508 = vmatpush3.bf16.msra.mxu1 %v2808_v37  ;;  %v2830_v37 = vld [vmem:[#allocation10 + $0xd8] sm:$0xff]  }
  0xff   : > { %740 = vmatprep.subr.bf16.mxu0 %v2782_v18  ;;  %2509 = vmatprep.subr.bf16.mxu1 %v2809_v38  ;;  %v2831_v38 = vld [vmem:[#allocation10 + $0xe0] sm:$0xff]  }
 0x102   : > { %741 = vmatpush1.bf16.msra.mxu0 %v2784_v19  ;;  %2510 = vmatpush3.bf16.msra.mxu1 %v2810_v39  ;;  %v2832_v39 = vld [vmem:[#allocation10 + $0xe8] sm:$0xff]  }
 0x103   : > { %742 = vmatprep.subr.bf16.mxu0 %v2785_v20  ;;  %2511 = vmatprep.subr.bf16.mxu1 %v2811_v40 }
 0x106   : > { %743 = vmatpush1.bf16.msra.mxu0 %v2787_v21  ;;  %2512 = vmatpush3.bf16.msra.mxu1 %v2812_v41  ;;  %v2365_v41 = vld [vmem:[%s3700_s6 + $0x2] ss:$0 sm:$0xff] }
 0x107   : > { %744 = vmatprep.subr.bf16.mxu0 %v2788_v22  ;;  %2513 = vmatprep.subr.bf16.mxu1 %v2813_v42 }
 0x10a   : > { %745 = vmatpush1.bf16.msra.mxu0 %v2790_v23  ;;  %2514 = vmatpush3.bf16.msra.mxu1 %v2814_v43 }
 0x10b   : > { %746 = vmatprep.subr.bf16.mxu0 %v2791_v24  ;;  %2515 = vmatprep.subr.bf16.mxu1 %v2815_v10 }
 0x10e   : > { %747 = vmatpush1.bf16.msra.mxu0 %v2793_v25  ;;  %v2819_v25 = vld [vmem:[#allocation10 + $0x80] sm:$0xff]  }
 0x10f   : > { %748 = vmatprep.subr.bf16.mxu0 %v2794_v26 }
 0x112   : > { %749 = vmatpush1.bf16.msra.mxu0 %v2796_v27  ;;  %v2820_v27 = vld [vmem:[#allocation10 + $0x88] sm:$0xff]  }
 0x113   : > { %750 = vmatprep.subr.bf16.mxu0 %v2797_v28  ;;  %v2821_v28 = vld [vmem:[#allocation10 + $0x90] sm:$0xff]  }
 0x116   : > { %751 = vmatpush1.bf16.msra.mxu0 %v2799_v29  ;;  %v2822_v29 = vld [vmem:[#allocation10 + $0x98] sm:$0xff]  }
 0x117   : > { %752 = vmatprep.subr.bf16.mxu0 %v2800_v30  ;;  %v2823_v30 = vld [vmem:[#allocation10 + $0xa0] sm:$0xff]  }
 0x11a   : > { %753 = vmatpush1.bf16.msra.mxu0 %v2802_v31  ;;  %v2824_v31 = vld [vmem:[#allocation10 + $0xa8] sm:$0xff]  }
 0x11b   : > { %2603 = vmatprep.subr.bf16.mxu0 %v3231_v12 }
 0x17c   : > { %v526_v44 = vpop.xlane.xlu0 %525 }
 0x17d   : > { %v533_v45 = vmul.f32 0.0052083335, %v526_v44 }
 0x17f   : > { %v535_v47 = vmul.f32 %v533_v45, %v533_v45  ;;  %v537_v57 = vsub.f32 %v3541_v0, %v533_v45  ;;  %v538_v58 = vsub.f32 %v3543_v1, %v533_v45  ;;  %v2816_v0 = vld [vmem:[#allocation10 + $0x30] sm:$0xff]   ;;  %v2817_v1 = vld [vmem:[#allocation10 + $0x78] sm:$0xff]  }
 0x180   : > { %v532_v46 = vpop.xlane.xlu0 %531  ;;  %2516 = vmatpush3.bf16.msra.mxu1 %v2816_v0 }
 0x181   : > { %v534_v48 = vmul.f32 0.0052083335, %v532_v46  ;;  %2517 = vmatprep.subr.bf16.mxu1 %v2817_v1 }
 0x183   : > { %v536_v49 = vsub.f32 %v534_v48, %v535_v47 }
 0x184   : > { %2518 = vmatpush3.bf16.msra.mxu1 %v2818_v11 }
 0x185   : > { %v539_v51 = vadd.f32 1e-05, %v536_v49  ;;  %2583 = vmatprep.subr.bf16.mxu1 %v3231_v12  ;;  %v2833_v49 = vld [vmem:[#allocation10 + $0xf0] sm:$0xff]  }
 0x187   : > { %2835 = vrsqrt.f32 %v539_v51  ;;  %v2382_v51 = vld [vmem:[%s3700_s6 + $0x3] ss:$0 sm:$0xff] }
 0x191   : > { %v2836_v61 = vpop.eup %2835 }
 0x192   : > { %v542_v62 = vmul.f32 %v2836_v61, %v538_v58  ;;  %v541_v3 = vmul.f32 %v2836_v61, %v537_v57 }
 0x194   : > { %v555_v4 = vmul.f32 %v551_v60, %v542_v62  ;;  %v554_v5 = vmul.f32 %v547_v59, %v541_v3  ;;  %v2391_v59 = vld [vmem:[%s3700_s6 + $0x4] ss:$0 sm:$0xff] }
 0x196   : > { %v568_v6 = vadd.f32 %v564_v2, %v555_v4  ;;  %v567_v7 = vadd.f32 %v560_v63, %v554_v5 }
 0x198   : > { %v570_v8 = vpack.c.bf16 %v568_v6, %v568_v6  ;;  %v569_v9 = vpack.c.bf16 %v567_v7, %v567_v7 }
 0x19a   : > { %2364 = vmatprep.mubr.msk.bf16.mxu0 %vm522_vm0, %v570_v8 }
 0x19b   : > { %763 = vmatmul.mubr.bf16.vlgmr.msra.gmra.mrb[0].mxu0 %v569_v9 }
 0x19c   : > { %2619 = vmatprep.mubr.msk.bf16.mxu0 %vm3232_vm1, %v3231_v12  ;;  %2604 = vmatpush3.bf16.msra.mxu0 %v2827_v34 }
 0x19d   : > { %2605 = vmatprep.subr.bf16.mxu0 %v3231_v12 }
 0x1a0   : > { %2606 = vmatpush3.bf16.msra.mxu0 %v2828_v35 }
 0x1a1   : > { %2607 = vmatprep.subr.bf16.mxu0 %v3231_v12 }
 0x1a4   : > { %2608 = vmatpush3.bf16.msra.mxu0 %v2829_v36 }
 0x1a5   : > { %2609 = vmatprep.subr.bf16.mxu0 %v3231_v12 }
 0x1a8   : > { %2610 = vmatpush3.bf16.msra.mxu0 %v2830_v37 }
 0x1a9   : > { %2611 = vmatprep.subr.bf16.mxu0 %v3231_v12 }
 0x1ac   : > { %2612 = vmatpush3.bf16.msra.mxu0 %v2831_v38 }
 0x1ad   : > { %2613 = vmatprep.subr.bf16.mxu0 %v3231_v12 }
 0x1b0   : > { %2614 = vmatpush3.bf16.msra.mxu0 %v2832_v39 }
 0x1b1   : > { %2615 = vmatprep.subr.bf16.mxu0 %v3231_v12 }
 0x1b4   : > { %2616 = vmatpush3.bf16.msra.mxu0 %v2833_v49 }
 0x1b5   : > { %2617 = vmatprep.subr.bf16.mxu0 %v3231_v12 }
 0x1b8   : > { %2618 = vmatpush3.bf16.msra.mxu0 %v2834_v50 }
 0x26e   : > { %v764_v16 = vpop.f32.mrb[0].mxu0 }
 0x26f   : > { %v765_v17 = vadd.f32 %v764_v16, %v600_v14  ;;  %v766_v18 = vpop.f32.mrb[1].mxu0 }
 0x270   : > { %v767_v19 = vadd.f32 %v766_v18, %v604_v15  ;;  %v768_v20 = vpop.f32.mrb[2].mxu0 }
 0x271   : > { %v771_v21 = vmax.f32 %v765_v17, 0.0  ;;  %v769_v22 = vpop.f32.mrb[3].mxu0 }
 0x272   : > { %v772_v23 = vmax.f32 %v767_v19, 0.0 }
 0x273   : > { %v773_v26 = vpack.c.bf16 %v771_v21, %v771_v21 }
 0x274   : > { %v774_v24 = vpack.c.bf16 %v772_v23, %v772_v23 }
 0x276   : > { %942 = vmatprep.mubr.bf16.mxu1 %v774_v24 }
 0x277   : > { %943 = vmatmul.mubr.bf16.vlgmr.msra.gmra.mrb[0].mxu1 %v773_v26 }
 0x278   : > { %2584 = vmatpush3.bf16.msra.mxu1 %v2819_v25  ;;  %2599 = vmatprep.mubr.msk.bf16.mxu1 %vm3232_vm1, %v3231_v12 }
 0x279   : > { %2585 = vmatprep.subr.bf16.mxu1 %v3231_v12 }
 0x27c   : > { %2586 = vmatpush3.bf16.msra.mxu1 %v2820_v27 }
 0x27d   : > { %2587 = vmatprep.subr.bf16.mxu1 %v3231_v12 }
 0x280   : > { %2588 = vmatpush3.bf16.msra.mxu1 %v2821_v28 }
 0x281   : > { %2589 = vmatprep.subr.bf16.mxu1 %v3231_v12 }
 0x284   : > { %2590 = vmatpush3.bf16.msra.mxu1 %v2822_v29 }
 0x285   : > { %2591 = vmatprep.subr.bf16.mxu1 %v3231_v12 }
 0x288   : > { %2592 = vmatpush3.bf16.msra.mxu1 %v2823_v30 }
 0x289   : > { %2593 = vmatprep.subr.bf16.mxu1 %v3231_v12 }
 0x28c   : > { %2594 = vmatpush3.bf16.msra.mxu1 %v2824_v31 }
 0x28d   : > { %2595 = vmatprep.subr.bf16.mxu1 %v3231_v12 }
 0x290   : > { %2596 = vmatpush3.bf16.msra.mxu1 %v2825_v32 }
 0x291   : > { %2597 = vmatprep.subr.bf16.mxu1 %v3231_v12 }
 0x294   : > { %2598 = vmatpush3.bf16.msra.mxu1 %v2826_v33 }
 0x34a   : > { %v2519_v40 = vpop.f32.mrb[0].mxu1 }
 0x34b   : > { %v2520_v42 = vpop.f32.mrb[1].mxu1 }
 0x34c   : > { %v2521_v43 = vadd.f32 %v2520_v42, %v2519_v40  ;;  %v2522_v44 = vpop.f32.mrb[2].mxu1 }
 0x34d   : > { %v2523_v45 = vpop.f32.mrb[3].mxu1 }
 0x34e   : > { %v945_v46 = vadd.f32 %v2521_v43, %v2365_v41 }
 0x350   : > { %v950_v47 = vmax.f32 %v945_v46, 0.0 }
 0x352   : > { %v951_v48 = vpack.c.bf16 %v950_v47, %v950_v47 }
 0x354   : > { %2600 = vmatmul.mubr.bf16.vlgmr.msra.gmra.mrb[4].mxu1 %v951_v48 }
 0x427   : > { %v1057_v52 = vpop.f32.mrb[4].mxu1 }
 0x428   : > { %v1058_v53 = vadd.f32 %v2382_v51, %v1057_v52  ;;  %v2601_v54 = vpop.f32.mrb[5].mxu1 }
 0x429   : > { %v1060_v55 = vpop.f32.mrb[6].mxu1 }
 0x42a   : > { %v1063_v56 = vmax.f32 %v1058_v53, 0.0  ;;  %v2602_v57 = vpop.f32.mrb[7].mxu1 }
 0x42c   : > { %v1064_v58 = vpack.c.bf16 %v1063_v56, %v1063_v56 }
 0x42e   : > { %2620 = vmatmul.mubr.bf16.vlgmr.msra.gmra.mrb[4].mxu0 %v1064_v58 }
 0x501   : > { %v1170_v60 = vpop.f32.mrb[4].mxu0 }
 0x502   : > { %v1171_v61 = vadd.f32 %v2391_v59, %v1170_v60  ;;  %v2621_v62 = vpop.f32.mrb[5].mxu0 }
 0x503   : > { %v1173_v63 = vpop.f32.mrb[6].mxu0 }
 0x504   : > { %1176 = vst [vmem:[%s3532_s22] sm:$0xff] %v1171_v61  ;;  %v2622_v2 = vpop.f32.mrb[7].mxu0 }
 0x505 PF: > { %p3734_p12 = scmp.eq.s32.totalorder %s3307_s24, 0 }
 0x506   : > { %v3233_v3 = vmov (!%p3734_p12), 0.0  }
 0x507   : > { %1180 = sbr.rel (%p3734_p12) target bundleno = 1294 (0x50e), region = 104  ;;  %1181 = vst [vmem:[%s3532_s22] sm:$0xff] (!%p3734_p12), %v3233_v3 }
 0x50e PF: > { %v1182_v4 = vld [vmem:[#allocation4] sm:$0xff]  ;;  %v1183_v5 = vld [vmem:[#allocation4 + $0x8] sm:$0xff]  ;;  %v1184_v6 = vld [vmem:[#allocation4 + $0x10] sm:$0xff]  ;;  %p3735_p3 = scmp.eq.s32.totalorder %s3307_s24, 0  ;;  %v1229_v47 = vlaneseq  ;;  %vm3235_vm3 = vmmov 0  }
 0x50f   : > { %v1185_v7 = vld [vmem:[#allocation4 + $0x18] sm:$0xff]  ;;  %v1186_v8 = vld [vmem:[#allocation6] sm:$0xff]  ;;  %v1187_v9 = vld [vmem:[#allocation6 + $0x8] sm:$0xff] }
 0x510   : > { %s1190_s14 = scalar_select %p3735_p3, 1, 0  ;;  %v1188_v10 = vld [vmem:[#allocation6 + $0x10] sm:$0xff]  ;;  %v1189_v0 = vld [vmem:[#allocation6 + $0x18] sm:$0xff]  ;;  %v2839_v12 = vld [vmem:[#allocation12] ss:$8 sps:$4 sm:$0xff]  }
 0x511   : > { %v2837_v11 = vld [vmem:[#allocation12 + $0x4] ss:$8 sps:$4 sm:$0xff]   ;;  %v2840_v16 = vld [vmem:[#allocation12 + $0x14] ss:$8 sps:$4 sm:$0xff]   ;;  %v2842_v22 = vld [vmem:[#allocation12 + $0x10] ss:$8 sps:$4 sm:$0xff]  }
 0x512   : > { %v1191_v1 = vstv %s1190_s14  ;;  %1678 = vmatprep.subr.bf16.mxu0 %v2837_v11  ;;  %v2843_v26 = vld [vmem:[#allocation12 + $0x24] ss:$8 sps:$4 sm:$0xff]   ;;  %v2845_v29 = vld [vmem:[#allocation12 + $0x20] ss:$8 sps:$4 sm:$0xff]   ;;  %v2846_v31 = vld [vmem:[#allocation12 + $0x34] ss:$8 sps:$4 sm:$0xff]  }
 0x513   : > { %vm1192_vm2 = vcmp.eq.s32.totalorder %v1191_v1, 1  ;;  %1679 = vmatpush1.bf16.msra.mxu0 %v2839_v12  ;;  %v2848_v32 = vld [vmem:[#allocation12 + $0x30] ss:$8 sps:$4 sm:$0xff]   ;;  %v2849_v33 = vld [vmem:[#allocation12 + $0x44] ss:$8 sps:$4 sm:$0xff]   ;;  %v3617_v50 = vshrl.u32 %v1229_v47, 7 }
 0x514   : > { %v3592_v13 = vsel %vm1192_vm2, %v1182_v4, %v1186_v8  ;;  %v3594_v14 = vsel %vm1192_vm2, %v1183_v5, %v1187_v9  ;;  %v3596_v15 = vsel %vm1192_vm2, %v1184_v6, %v1188_v10  ;;  %v3606_v21 = vsel %vm1192_vm2, %v1185_v7, %v1189_v0  ;;  %1680 = vmatprep.subr.bf16.mxu0 %v2840_v16  ;;  %v2851_v34 = vld [vmem:[#allocation12 + $0x40] ss:$8 sps:$4 sm:$0xff]   ;;  %v2852_v35 = vld [vmem:[#allocation12 + $0x54] ss:$8 sps:$4 sm:$0xff]   ;;  %v2854_v36 = vld [vmem:[#allocation12 + $0x50] ss:$8 sps:$4 sm:$0xff]  }
 0x515   : > { %v1200_v17 = vadd.f32 %v3594_v14, %v3592_v13  ;;  %v1205_v18 = vmul.f32 %v3592_v13, %v3592_v13  ;;  %v1206_v19 = vmul.f32 %v3594_v14, %v3594_v14  ;;  %v1207_v20 = vmul.f32 %v3596_v15, %v3596_v15  ;;  %v2855_v37 = vld [vmem:[#allocation12 + $0x64] ss:$8 sps:$4 sm:$0xff]   ;;  %v2857_v38 = vld [vmem:[#allocation12 + $0x60] ss:$8 sps:$4 sm:$0xff]   ;;  %v2858_v39 = vld [vmem:[#allocation12 + $0x74] ss:$8 sps:$4 sm:$0xff]  }
 0x516   : > { %v1208_v24 = vmul.f32 %v3606_v21, %v3606_v21  ;;  %v2860_v40 = vld [vmem:[#allocation12 + $0x70] ss:$8 sps:$4 sm:$0xff]   ;;  %v2861_v41 = vld [vmem:[#allocation12 + $0x84] ss:$8 sps:$4 sm:$0xff]   ;;  %v2863_v42 = vld [vmem:[#allocation12 + $0x80] ss:$8 sps:$4 sm:$0xff]  }
 0x517   : > { %v1201_v23 = vadd.f32 %v1200_v17, %v3596_v15  ;;  %v1209_v25 = vadd.f32 %v1206_v19, %v1205_v18  ;;  %1681 = vmatpush1.bf16.msra.mxu0 %v2842_v22  ;;  %v2864_v43 = vld [vmem:[#allocation12 + $0x94] ss:$8 sps:$4 sm:$0xff]   ;;  %v2866_v44 = vld [vmem:[#allocation12 + $0x90] ss:$8 sps:$4 sm:$0xff]   ;;  %v2867_v45 = vld [vmem:[#allocation12 + $0xa4] ss:$8 sps:$4 sm:$0xff]  }
 0x518   : > { %1682 = vmatprep.subr.bf16.mxu0 %v2843_v26  ;;  %v2869_v46 = vld [vmem:[#allocation12 + $0xa0] ss:$8 sps:$4 sm:$0xff]   ;;  %v2870_v48 = vld [vmem:[#allocation12 + $0xb4] ss:$8 sps:$4 sm:$0xff]   ;;  %v2872_v51 = vld [vmem:[#allocation12 + $0xb0] ss:$8 sps:$4 sm:$0xff]  }
 0x519   : > { %v1202_v27 = vadd.f32 %v1201_v23, %v3606_v21  ;;  %v1210_v28 = vadd.f32 %v1209_v25, %v1207_v20  ;;  %v3615_v49 = vld [vmem:[%s3701_s7] ss:$2 sm:$0xf]  ;;  %v3622_v52 = vld [vmem:[%s3701_s7 + $0x1] ss:$2 sm:$0xf] }
 0x51a   : > { %v2873_v53 = vld [vmem:[#allocation12 + $0xc4] ss:$8 sps:$4 sm:$0xff]   ;;  %v1239_v54 = vsub.s32 2, %v3617_v50  ;;  %v2875_v56 = vld [vmem:[#allocation12 + $0xc0] ss:$8 sps:$4 sm:$0xff]   ;;  %v2937_v7 = vld [vmem:[#allocation13 + $0x50] sm:$0xff]  }
 0x51b   : > { %1203 = vadd.xlane.f32.xlu0 %v1202_v27  ;;  %v1211_v30 = vadd.f32 %v1210_v28, %v1208_v24  ;;  %1683 = vmatpush1.bf16.msra.mxu0 %v2845_v29  ;;  %v2876_v57 = vld [vmem:[#allocation12 + $0xd4] ss:$8 sps:$4 sm:$0xff]   ;;  %v2878_v59 = vld [vmem:[#allocation12 + $0xd0] ss:$8 sps:$4 sm:$0xff]   ;;  %v2879_v60 = vld [vmem:[#allocation12 + $0xe4] ss:$8 sps:$4 sm:$0xff]  }
 0x51c   : > { %1684 = vmatprep.subr.bf16.mxu0 %v2846_v31  ;;  %v3626_v55 = vrot.slane %v3615_v49, %v1239_v54  ;;  %v3629_v58 = vrot.slane %v3622_v52, %v1239_v54  ;;  %v2881_v61 = vld [vmem:[#allocation12 + $0xe0] ss:$8 sps:$4 sm:$0xff]   ;;  %v2882_v62 = vld [vmem:[#allocation12 + $0xf4] ss:$8 sps:$4 sm:$0xff]   ;;  %v2884_v63 = vld [vmem:[#allocation12 + $0xf0] ss:$8 sps:$4 sm:$0xff]  }
 0x51d   : > { %v2887_v2 = vld [vmem:[#allocation12 + $0x104] ss:$8 sps:$4 sm:$0xff]   ;;  %v2938_v8 = vld [vmem:[#allocation13 + $0x10] sm:$0xff]   ;;  %v2939_v9 = vld [vmem:[#allocation13 + $0x58] sm:$0xff]   ;;  %v3632_v24 = vsub.s32 1, %v3617_v50  ;;  %v3635_v25 = vsub.s32 0, %v3617_v50 }
 0x51e   : > { %v2933_v3 = vld [vmem:[#allocation13 + $0x40] sm:$0xff]   ;;  %v2935_v5 = vld [vmem:[#allocation13 + $0x48] sm:$0xff]   ;;  %v2940_v10 = vld [vmem:[#allocation13 + $0x18] sm:$0xff]   ;;  %v1243_v26 = vsub.s32 3, %v3617_v50 }
 0x51f   : > { %1212 = vadd.xlane.f32.xlu0 %v1211_v30  ;;  %1685 = vmatpush1.bf16.msra.mxu0 %v2848_v32  ;;  %v2934_v4 = vld [vmem:[#allocation13] sm:$0xff]   ;;  %v2936_v6 = vld [vmem:[#allocation13 + $0x8] sm:$0xff]   ;;  %v1236_v27 = vrot.slane %v3615_v49, %v3632_v24  ;;  %v1232_v28 = vrot.slane %v3615_v49, %v3635_v25  ;;  %v2896_v54 = vld [vmem:[#allocation12 + $0x134] ss:$8 sps:$4 sm:$0xff]  }
 0x520   : > { %1686 = vmatprep.subr.bf16.mxu0 %v2849_v33  ;;  %2543 = vmatprep.subr.bf16.mxu1 %v2933_v3  ;;  %v2941_v0 = vld [vmem:[#allocation13 + $0x60] sm:$0xff]   ;;  %v2943_v11 = vld [vmem:[#allocation13 + $0x68] sm:$0xff]   ;;  %v1244_v29 = vrot.slane %v3615_v49, %v1243_v26  ;;  %v2890_v49 = vld [vmem:[#allocation12 + $0x114] ss:$8 sps:$4 sm:$0xff]  }
 0x521   : > { %2544 = vmatpush3.bf16.msra.mxu1 %v2934_v4  ;;  %v2942_v1 = vld [vmem:[#allocation13 + $0x20] sm:$0xff]   ;;  %v2944_v12 = vld [vmem:[#allocation13 + $0x28] sm:$0xff]   ;;  %v2914_v4 = vld [vmem:[#allocation12 + $0x194] ss:$8 sps:$4 sm:$0xff]  }
 0x522   : > { %2545 = vmatprep.subr.bf16.mxu1 %v2935_v5  ;;  %v2885_v47 = vld [vmem:[#allocation12 + $0x100] ss:$8 sps:$4 sm:$0xff]   ;;  %v2912_v5 = vld [vmem:[#allocation12 + $0x190] ss:$8 sps:$4 sm:$0xff]  }
 0x523   : > { %1687 = vmatpush1.bf16.msra.mxu0 %v2851_v34  ;;  %v2909_v3 = vld [vmem:[#allocation12 + $0x180] ss:$8 sps:$4 sm:$0xff]  }
 0x524   : > { %1688 = vmatprep.subr.bf16.mxu0 %v2852_v35  ;;  %v1261_v35 = vrot.slane %v3622_v52, %v3632_v24 }
 0x525   : > { %2546 = vmatpush3.bf16.msra.mxu1 %v2936_v6  ;;  %v2917_v6 = vld [vmem:[#allocation12 + $0x1a4] ss:$8 sps:$4 sm:$0xff]  }
 0x526   : > { %2547 = vmatprep.subr.bf16.mxu1 %v2937_v7  ;;  %v2915_v7 = vld [vmem:[#allocation12 + $0x1a0] ss:$8 sps:$4 sm:$0xff]  }
 0x527   : > { %1689 = vmatpush1.bf16.msra.mxu0 %v2854_v36  ;;  %v1257_v36 = vrot.slane %v3622_v52, %v3635_v25 }
 0x528   : > { %1690 = vmatprep.subr.bf16.mxu0 %v2855_v37  ;;  %v1269_v37 = vrot.slane %v3622_v52, %v1243_v26  ;;  %v2893_v52 = vld [vmem:[#allocation12 + $0x124] ss:$8 sps:$4 sm:$0xff]   ;;  %v2948_v26 = vld [vmem:[#allocation13 + $0x38] sm:$0xff]  }
 0x529   : > { %2548 = vmatpush3.bf16.msra.mxu1 %v2938_v8  ;;  %v2920_v8 = vld [vmem:[#allocation12 + $0x1b4] ss:$8 sps:$4 sm:$0xff]  }
 0x52a   : > { %2549 = vmatprep.subr.bf16.mxu1 %v2939_v9  ;;  %v2918_v9 = vld [vmem:[#allocation12 + $0x1b0] ss:$8 sps:$4 sm:$0xff]  }
 0x52b   : > { %1691 = vmatpush1.bf16.msra.mxu0 %v2857_v38 }
 0x52c   : > { %1692 = vmatprep.subr.bf16.mxu0 %v2858_v39 }
 0x52d   : > { %2550 = vmatpush3.bf16.msra.mxu1 %v2940_v10  ;;  %v2923_v10 = vld [vmem:[#allocation12 + $0x1c4] ss:$8 sps:$4 sm:$0xff]  }
 0x52e   : > { %2551 = vmatprep.subr.bf16.mxu1 %v2941_v0  ;;  %v2921_v0 = vld [vmem:[#allocation12 + $0x1c0] ss:$8 sps:$4 sm:$0xff]  }
 0x52f   : > { %1693 = vmatpush1.bf16.msra.mxu0 %v2860_v40 }
 0x530   : > { %1694 = vmatprep.subr.bf16.mxu0 %v2861_v41 }
 0x531   : > { %2552 = vmatpush3.bf16.msra.mxu1 %v2942_v1  ;;  %v2926_v1 = vld [vmem:[#allocation12 + $0x1d4] ss:$8 sps:$4 sm:$0xff]  }
 0x532   : > { %2553 = vmatprep.subr.bf16.mxu1 %v2943_v11  ;;  %v2924_v11 = vld [vmem:[#allocation12 + $0x1d0] ss:$8 sps:$4 sm:$0xff]  }
 0x533   : > { %1695 = vmatpush1.bf16.msra.mxu0 %v2863_v42 }
 0x534   : > { %1696 = vmatprep.subr.bf16.mxu0 %v2864_v43 }
 0x535   : > { %2554 = vmatpush3.bf16.msra.mxu1 %v2944_v12  ;;  %v2929_v12 = vld [vmem:[#allocation12 + $0x1e4] ss:$8 sps:$4 sm:$0xff]  }
 0x537   : > { %1697 = vmatpush1.bf16.msra.mxu0 %v2866_v44 }
 0x538   : > { %1698 = vmatprep.subr.bf16.mxu0 %v2867_v45 }
 0x53b   : > { %1699 = vmatpush1.bf16.msra.mxu0 %v2869_v46 }
 0x53c   : > { %1700 = vmatprep.subr.bf16.mxu0 %v2870_v48 }
 0x53f   : > { %1701 = vmatpush1.bf16.msra.mxu0 %v2872_v51  ;;  %v2888_v51 = vld [vmem:[#allocation12 + $0x110] ss:$8 sps:$4 sm:$0xff]  }
 0x540   : > { %1702 = vmatprep.subr.bf16.mxu0 %v2873_v53  ;;  %v2891_v53 = vld [vmem:[#allocation12 + $0x120] ss:$8 sps:$4 sm:$0xff]  }
 0x543   : > { %1703 = vmatpush1.bf16.msra.mxu0 %v2875_v56  ;;  %v2899_v56 = vld [vmem:[#allocation12 + $0x144] ss:$8 sps:$4 sm:$0xff]  }
 0x544   : > { %1704 = vmatprep.subr.bf16.mxu0 %v2876_v57  ;;  %v2897_v57 = vld [vmem:[#allocation12 + $0x140] ss:$8 sps:$4 sm:$0xff]  }
 0x547   : > { %1705 = vmatpush1.bf16.msra.mxu0 %v2878_v59  ;;  %v2900_v59 = vld [vmem:[#allocation12 + $0x150] ss:$8 sps:$4 sm:$0xff]  }
 0x548   : > { %1706 = vmatprep.subr.bf16.mxu0 %v2879_v60  ;;  %v2905_v60 = vld [vmem:[#allocation12 + $0x164] ss:$8 sps:$4 sm:$0xff]  }
 0x54b   : > { %1707 = vmatpush1.bf16.msra.mxu0 %v2881_v61  ;;  %v2903_v61 = vld [vmem:[#allocation12 + $0x160] ss:$8 sps:$4 sm:$0xff]  }
 0x54c   : > { %1708 = vmatprep.subr.bf16.mxu0 %v2882_v62  ;;  %v2908_v62 = vld [vmem:[#allocation12 + $0x174] ss:$8 sps:$4 sm:$0xff]  }
 0x54f   : > { %1709 = vmatpush1.bf16.msra.mxu0 %v2884_v63  ;;  %v2906_v63 = vld [vmem:[#allocation12 + $0x170] ss:$8 sps:$4 sm:$0xff]  }
 0x550   : > { %1719 = vmatprep.subr.bf16.mxu0 %v2887_v2  ;;  %v2911_v2 = vld [vmem:[#allocation12 + $0x184] ss:$8 sps:$4 sm:$0xff]  }
 0x5a8   : > { %v1204_v16 = vpop.xlane.xlu0 %1203 }
 0x5a9   : > { %v1214_v17 = vmul.f32 0.001953125, %v1204_v16  ;;  %v2927_v16 = vld [vmem:[#allocation12 + $0x1e0] ss:$8 sps:$4 sm:$0xff]  }
 0x5ab   : > { %v1216_v19 = vmul.f32 %v1214_v17, %v1214_v17  ;;  %v1220_v30 = vsub.f32 %v3596_v15, %v1214_v17  ;;  %v1219_v31 = vsub.f32 %v3594_v14, %v1214_v17  ;;  %v1218_v32 = vsub.f32 %v3592_v13, %v1214_v17 }
 0x5ac   : > { %v1213_v18 = vpop.xlane.xlu0 %1212  ;;  %v1221_v33 = vsub.f32 %v3606_v21, %v1214_v17  ;;  %v2932_v17 = vld [vmem:[#allocation12 + $0x1f4] ss:$8 sps:$4 sm:$0xff]  }
 0x5ad   : > { %v1215_v20 = vmul.f32 0.001953125, %v1213_v18  ;;  %v2930_v18 = vld [vmem:[#allocation12 + $0x1f0] ss:$8 sps:$4 sm:$0xff]  }
 0x5af   : > { %v1217_v22 = vsub.f32 %v1215_v20, %v1216_v19  ;;  %v2945_v20 = vld [vmem:[#allocation13 + $0x70] sm:$0xff]  }
 0x5b0   : > { %2555 = vmatprep.subr.bf16.mxu1 %v2945_v20 }
 0x5b1   : > { %v1222_v23 = vadd.f32 1e-05, %v1217_v22  ;;  %v2946_v22 = vld [vmem:[#allocation13 + $0x30] sm:$0xff]  }
 0x5b2   : > { %2556 = vmatpush3.bf16.msra.mxu1 %v2946_v22 }
 0x5b3   : > { %2965 = vrsqrt.f32 %v1222_v23  ;;  %v2947_v23 = vld [vmem:[#allocation13 + $0x78] sm:$0xff]  }
 0x5b4   : > { %2557 = vmatprep.subr.bf16.mxu1 %v2947_v23 }
 0x5b6   : > { %2558 = vmatpush3.bf16.msra.mxu1 %v2948_v26 }
 0x5bd   : > { %v2966_v34 = vpop.eup %2965 }
 0x5be   : > { %v1225_v38 = vmul.f32 %v2966_v34, %v1219_v31  ;;  %v1224_v39 = vmul.f32 %v2966_v34, %v1218_v32  ;;  %v1227_v40 = vmul.f32 %v2966_v34, %v1221_v33  ;;  %v1226_v41 = vmul.f32 %v2966_v34, %v1220_v30 }
 0x5c0   : > { %v1250_v15 = vmul.f32 %v1236_v27, %v1225_v38  ;;  %v1249_v42 = vmul.f32 %v1232_v28, %v1224_v39  ;;  %v1252_v14 = vmul.f32 %v1244_v29, %v1227_v40  ;;  %v1251_v13 = vmul.f32 %v3626_v55, %v1226_v41  ;;  %v2894_v55 = vld [vmem:[#allocation12 + $0x130] ss:$8 sps:$4 sm:$0xff]   ;;  %v1346_v28 = vld [vmem:[%s3704_s10] sm:$0x3]  ;;  %v2949_v40 = vld [vmem:[#allocation13 + $0x80] sm:$0xff]  }
 0x5c1   : > { %v3234_v27 = vmov 0.0   ;;  %v1351_v29 = vrot.slane %v1346_v28, %v3635_v25  ;;  %v1355_v30 = vrot.slane %v1346_v28, %v3632_v24  ;;  %v2951_v25 = vld [vmem:[#allocation13 + $0x90] sm:$0xff]   ;;  %v2952_v24 = vld [vmem:[#allocation13 + $0x98] sm:$0xff]  }
 0x5c2   : > { %v1275_v43 = vadd.f32 %v1261_v35, %v1250_v15  ;;  %v1274_v21 = vadd.f32 %v1257_v36, %v1249_v42  ;;  %v1277_v44 = vadd.f32 %v1269_v37, %v1252_v14  ;;  %v3654_v45 = vadd.f32 %v3629_v58, %v1251_v13  ;;  %v2902_v58 = vld [vmem:[#allocation12 + $0x154] ss:$8 sps:$4 sm:$0xff]   ;;  %2623 = vmatprep.subr.bf16.mxu1 %v3234_v27  ;;  %v2950_v15 = vld [vmem:[#allocation13 + $0x88] sm:$0xff]   ;;  %v2953_v42 = vld [vmem:[#allocation13 + $0xa0] sm:$0xff]  }
 0x5c3   : > { %v2954_v14 = vld [vmem:[#allocation13 + $0xa8] sm:$0xff]   ;;  %v2955_v13 = vld [vmem:[#allocation13 + $0xb0] sm:$0xff]  }
 0x5c4   : > { %v1279_v46 = vpack.c.bf16 %v1275_v43, %v1275_v43  ;;  %v1278_v48 = vpack.c.bf16 %v1274_v21, %v1274_v21  ;;  %v1281_v50 = vpack.c.bf16 %v1277_v44, %v1277_v44  ;;  %v1280_v19 = vpack.c.bf16 %v3654_v45, %v3654_v45  ;;  %v2956_v43 = vld [vmem:[#allocation13 + $0xb8] sm:$0xff]   ;;  %v2466_v44 = vld [vmem:[%s3704_s10 + $0x2] ss:$0 sm:$0xff] }
 0x5c6   : > { %1710 = vmatprep.mubr.bf16.mxu0 %v1279_v46 }
 0x5c7   : > { %1711 = vmatmul.mubr.bf16.vlgmr.msra.gmra.mrb[0].mxu0 %v1278_v48 }
 0x5c8   : > { %1720 = vmatpush1.bf16.msra.mxu0 %v2885_v47  ;;  %1751 = vmatprep.mubr.bf16.mxu0 %v1281_v50 }
 0x5c9   : > { %1721 = vmatprep.subr.bf16.mxu0 %v2890_v49 }
 0x5cc   : > { %1722 = vmatpush1.bf16.msra.mxu0 %v2888_v51  ;;  %v2957_v51 = vld [vmem:[#allocation13 + $0xc0] sm:$0xff]  }
 0x5cd   : > { %1723 = vmatprep.subr.bf16.mxu0 %v2893_v52 }
 0x5d0   : > { %1724 = vmatpush1.bf16.msra.mxu0 %v2891_v53  ;;  %v2958_v53 = vld [vmem:[#allocation13 + $0xc8] sm:$0xff]  }
 0x5d1   : > { %1725 = vmatprep.subr.bf16.mxu0 %v2896_v54  ;;  %v2959_v54 = vld [vmem:[#allocation13 + $0xd0] sm:$0xff]  }
 0x5d4   : > { %1726 = vmatpush1.bf16.msra.mxu0 %v2894_v55  ;;  %v2960_v55 = vld [vmem:[#allocation13 + $0xd8] sm:$0xff]  }
 0x5d5   : > { %1727 = vmatprep.subr.bf16.mxu0 %v2899_v56  ;;  %v2961_v56 = vld [vmem:[#allocation13 + $0xe0] sm:$0xff]  }
 0x5d8   : > { %1728 = vmatpush1.bf16.msra.mxu0 %v2897_v57  ;;  %v2962_v57 = vld [vmem:[#allocation13 + $0xe8] sm:$0xff]  }
 0x5d9   : > { %1729 = vmatprep.subr.bf16.mxu0 %v2902_v58  ;;  %v2963_v58 = vld [vmem:[#allocation13 + $0xf0] sm:$0xff]  }
 0x5dc   : > { %1730 = vmatpush1.bf16.msra.mxu0 %v2900_v59  ;;  %v2964_v59 = vld [vmem:[#allocation13 + $0xf8] sm:$0xff]  }
 0x5dd   : > { %1731 = vmatprep.subr.bf16.mxu0 %v2905_v60  ;;  %v2483_v60 = vld [vmem:[%s3704_s10 + $0x3] ss:$0 sm:$0xff] }
 0x5e0   : > { %1732 = vmatpush1.bf16.msra.mxu0 %v2903_v61 }
 0x5e1   : > { %1733 = vmatprep.subr.bf16.mxu0 %v2908_v62 }
 0x5e4   : > { %1734 = vmatpush1.bf16.msra.mxu0 %v2906_v63 }
 0x5e5   : > { %1735 = vmatprep.subr.bf16.mxu0 %v2911_v2 }
 0x5e8   : > { %1736 = vmatpush1.bf16.msra.mxu0 %v2909_v3 }
 0x5e9   : > { %1737 = vmatprep.subr.bf16.mxu0 %v2914_v4 }
 0x5ec   : > { %1738 = vmatpush1.bf16.msra.mxu0 %v2912_v5 }
 0x5ed   : > { %1739 = vmatprep.subr.bf16.mxu0 %v2917_v6  ;;  %v2492_v6 = vld [vmem:[%s3704_s10 + $0x4] ss:$0 sm:$0xff] }
 0x5f0   : > { %1740 = vmatpush1.bf16.msra.mxu0 %v2915_v7 }
 0x5f1   : > { %1741 = vmatprep.subr.bf16.mxu0 %v2920_v8 }
 0x5f4   : > { %1742 = vmatpush1.bf16.msra.mxu0 %v2918_v9 }
 0x5f5   : > { %1743 = vmatprep.subr.bf16.mxu0 %v2923_v10 }
 0x5f8   : > { %1744 = vmatpush1.bf16.msra.mxu0 %v2921_v0 }
 0x5f9   : > { %1745 = vmatprep.subr.bf16.mxu0 %v2926_v1 }
 0x5fc   : > { %1746 = vmatpush1.bf16.msra.mxu0 %v2924_v11 }
 0x5fd   : > { %1747 = vmatprep.subr.bf16.mxu0 %v2929_v12 }
 0x600   : > { %1748 = vmatpush1.bf16.msra.mxu0 %v2927_v16 }
 0x601   : > { %1749 = vmatprep.subr.bf16.mxu0 %v2932_v17 }
 0x604   : > { %1750 = vmatpush1.bf16.msra.mxu0 %v2930_v18 }
 0x607   : > { %1752 = vmatmul.mubr.bf16.vlgmr.msra.gmra.mrb[0].mxu0 %v1280_v19 }
 0x6da   : > { %v1753_v31 = vpop.f32.mrb[0].mxu0 }
 0x6db   : > { %v2663_v32 = vadd.f32 %v1753_v31, %v1351_v29  ;;  %v1755_v33 = vpop.f32.mrb[1].mxu0 }
 0x6dc   : > { %v2664_v34 = vadd.f32 %v1755_v33, %v1355_v30  ;;  %v1757_v35 = vpop.f32.mrb[2].mxu0 }
 0x6dd   : > { %v1760_v36 = vmax.f32 %v2663_v32, 0.0  ;;  %v1758_v37 = vpop.f32.mrb[3].mxu0 }
 0x6de   : > { %v1761_v38 = vmax.f32 %v2664_v34, 0.0 }
 0x6df   : > { %v1762_v41 = vpack.c.bf16 %v1760_v36, %v1760_v36 }
 0x6e0   : > { %v1763_v39 = vpack.c.bf16 %v1761_v38, %v1761_v38 }
 0x6e2   : > { %1931 = vmatprep.mubr.bf16.mxu1 %v1763_v39 }
 0x6e3   : > { %1932 = vmatmul.mubr.bf16.vlgmr.msra.gmra.mrb[0].mxu1 %v1762_v41 }
 0x6e4   : > { %2624 = vmatpush3.bf16.msra.mxu1 %v2949_v40  ;;  %2639 = vmatprep.mubr.msk.bf16.mxu1 %vm3235_vm3, %v3234_v27 }
 0x6e5   : > { %2625 = vmatprep.subr.bf16.mxu1 %v3234_v27 }
 0x6e8   : > { %2626 = vmatpush3.bf16.msra.mxu1 %v2950_v15 }
 0x6e9   : > { %2627 = vmatprep.subr.bf16.mxu1 %v3234_v27 }
 0x6ec   : > { %2628 = vmatpush3.bf16.msra.mxu1 %v2951_v25 }
 0x6ed   : > { %2629 = vmatprep.subr.bf16.mxu1 %v3234_v27 }
 0x6f0   : > { %2630 = vmatpush3.bf16.msra.mxu1 %v2952_v24 }
 0x6f1   : > { %2631 = vmatprep.subr.bf16.mxu1 %v3234_v27 }
 0x6f4   : > { %2632 = vmatpush3.bf16.msra.mxu1 %v2953_v42 }
 0x6f5   : > { %2633 = vmatprep.subr.bf16.mxu1 %v3234_v27 }
 0x6f8   : > { %2634 = vmatpush3.bf16.msra.mxu1 %v2954_v14 }
 0x6f9   : > { %2635 = vmatprep.subr.bf16.mxu1 %v3234_v27 }
 0x6fc   : > { %2636 = vmatpush3.bf16.msra.mxu1 %v2955_v13 }
 0x6fd   : > { %2637 = vmatprep.subr.bf16.mxu1 %v3234_v27 }
 0x700   : > { %2638 = vmatpush3.bf16.msra.mxu1 %v2956_v43 }
 0x701   : > { %2643 = vmatprep.subr.bf16.mxu1 %v3234_v27 }
 0x7b6   : > { %v2559_v21 = vpop.f32.mrb[0].mxu1 }
 0x7b7   : > { %v2560_v45 = vpop.f32.mrb[1].mxu1 }
 0x7b8   : > { %v2561_v46 = vadd.f32 %v2560_v45, %v2559_v21  ;;  %v2562_v47 = vpop.f32.mrb[2].mxu1 }
 0x7b9   : > { %v2563_v48 = vpop.f32.mrb[3].mxu1 }
 0x7ba   : > { %v1934_v49 = vadd.f32 %v2561_v46, %v2466_v44 }
 0x7bc   : > { %v1939_v50 = vmax.f32 %v1934_v49, 0.0 }
 0x7be   : > { %v1940_v52 = vpack.c.bf16 %v1939_v50, %v1939_v50 }
 0x7c0   : > { %2640 = vmatmul.mubr.bf16.vlgmr.msra.gmra.mrb[4].mxu1 %v1940_v52 }
 0x7c1   : > { %2644 = vmatpush3.bf16.msra.mxu1 %v2957_v51  ;;  %2659 = vmatprep.mubr.msk.bf16.mxu1 %vm3235_vm3, %v3234_v27 }
 0x7c2   : > { %2645 = vmatprep.subr.bf16.mxu1 %v3234_v27 }
 0x7c5   : > { %2646 = vmatpush3.bf16.msra.mxu1 %v2958_v53 }
 0x7c6   : > { %2647 = vmatprep.subr.bf16.mxu1 %v3234_v27 }
 0x7c9   : > { %2648 = vmatpush3.bf16.msra.mxu1 %v2959_v54 }
 0x7ca   : > { %2649 = vmatprep.subr.bf16.mxu1 %v3234_v27 }
 0x7cd   : > { %2650 = vmatpush3.bf16.msra.mxu1 %v2960_v55 }
 0x7ce   : > { %2651 = vmatprep.subr.bf16.mxu1 %v3234_v27 }
 0x7d1   : > { %2652 = vmatpush3.bf16.msra.mxu1 %v2961_v56 }
 0x7d2   : > { %2653 = vmatprep.subr.bf16.mxu1 %v3234_v27 }
 0x7d5   : > { %2654 = vmatpush3.bf16.msra.mxu1 %v2962_v57 }
 0x7d6   : > { %2655 = vmatprep.subr.bf16.mxu1 %v3234_v27 }
 0x7d9   : > { %2656 = vmatpush3.bf16.msra.mxu1 %v2963_v58 }
 0x7da   : > { %2657 = vmatprep.subr.bf16.mxu1 %v3234_v27 }
 0x7dd   : > { %2658 = vmatpush3.bf16.msra.mxu1 %v2964_v59 }
 0x893   : > { %v2046_v61 = vpop.f32.mrb[4].mxu1 }
 0x894   : > { %v2047_v62 = vadd.f32 %v2483_v60, %v2046_v61  ;;  %v2641_v63 = vpop.f32.mrb[5].mxu1 }
 0x895   : > { %v2049_v2 = vpop.f32.mrb[6].mxu1 }
 0x896   : > { %v2052_v3 = vmax.f32 %v2047_v62, 0.0  ;;  %v2642_v4 = vpop.f32.mrb[7].mxu1 }
 0x898   : > { %v2053_v5 = vpack.c.bf16 %v2052_v3, %v2052_v3 }
 0x89a   : > { %2660 = vmatmul.mubr.bf16.vlgmr.msra.gmra.mrb[8].mxu1 %v2053_v5 }
 0x96d   : > { %v2159_v7 = vpop.f32.mrb[8].mxu1 }
 0x96e   : > { %v2160_v8 = vadd.f32 %v2492_v6, %v2159_v7  ;;  %v2661_v9 = vpop.f32.mrb[9].mxu1 }
 0x96f   : > { %v2162_v10 = vpop.f32.mrb[10].mxu1 }
 0x970   : > { %2165 = vst [vmem:[%s3537_s1] sm:$0xff] %v2160_v8  ;;  %v2662_v0 = vpop.f32.mrb[11].mxu1 }
 0x971 PF: > { %s28_s21 = sadd.s32 1, %s3217_s21  }
 0x972   : > { %p25_p8 = scmp.ge.s32.totalorder %s28_s21, 4  }
 0x974   :  { %27 = sbr.rel (!%p25_p8) target bundleno = 9 (0x9), region = 146 }
 0x97b   :  { %2199 = vsyncpa [#allocation3], 1 }
 0x97c   :  { %2201 = vsyncpa [#allocation3 + $0x1], 1 }
 0x97d   :  { %2202 = vsyncpa [#allocation5], 1 }
 0x97e   :  { %2203 = vsyncpa [#allocation8], 1 }
 0x97f   :  { %2204 = vsyncpa [#allocation11], 1 }
 0x980   :  { %2205 = vsyncpa [#allocation14], 1 }

</bundles_post_ra>
